<compile_context>
chip_gen: v5e
topology: v5e:2x2
jax: 0.10.0
libtpu: 0.0.40
codegen_flags: <defaults>
</compile_context>

<pallas_src>
import jax
import jax.numpy as jnp
from jax import lax
from jax.experimental import pallas as pl
from jax.experimental.pallas import tpu as pltpu

_LANE = 128


def _round_up(x, m):
    return (x + m - 1) // m * m


def _pad_to(x, shape):
    pads = [(0, t - s) for s, t in zip(x.shape, shape)]
    return jnp.pad(x, pads)


def _lstm_kernel(tokens_ref, w_xg_ref, w_hh_ref, b_ref, w_dec_ref, b_dec_ref,
                 h0_ref, c0_ref, out_ref, h_out_ref, c_out_ref):
    S = out_ref.shape[0]
    Hp = h0_ref.shape[1]          # lane-padded hidden size (multiple of 128)
    Vp = w_xg_ref.shape[0]        # lane-padded vocab size

    # --- in-kernel embedding lookup fused with the input projection (off the serial chain) ---
    # one_hot(tokens) @ (emb_table @ W_ih^T)  ==  emb_table[tokens] @ W_ih^T
    col = lax.broadcasted_iota(jnp.int32, (1, Vp), 1)
    rows = [jnp.where(col == tokens_ref[t], 1.0, 0.0) for t in range(S)]
    onehot = jnp.concatenate(rows, axis=0).astype(jnp.bfloat16)              # (S, Vp)
    xg = jnp.dot(onehot, w_xg_ref[...],
                 preferred_element_type=jnp.float32) + b_ref[...]            # (S, 4Hp) f32

    # --- serial recurrence; gate blocks laid out [i, f, o, g]; bf16 RHS held as a value ---
    w_hh = w_hh_ref[...]                                                     # (Hp, 4Hp) bf16
    h = h0_ref[...]                                                          # (1, Hp) f32
    c = c0_ref[...]
    hs = []
    for t in range(S):                                                       # S is static & small
        gates = xg[t:t + 1, :] + jnp.dot(h.astype(jnp.bfloat16), w_hh,
                                         preferred_element_type=jnp.float32)  # (1, 4Hp)
        sig = jax.nn.sigmoid(gates[:, 0:3 * Hp])          # i, f, o in one EUP launch
        i_g = sig[:, 0 * Hp:1 * Hp]
        f_g = sig[:, 1 * Hp:2 * Hp]
        o_g = sig[:, 2 * Hp:3 * Hp]
        g_g = jnp.tanh(gates[:, 3 * Hp:4 * Hp])
        c = f_g * c + i_g * g_g
        h = o_g * jnp.tanh(c)
        hs.append(h)
    hs = jnp.concatenate(hs, axis=0)                                         # (S, Hp) f32

    # --- decoder: lane-dense (S, Hp) @ (Hp, Op) + bias, fed straight from vregs ---
    out_ref[...] = (jnp.dot(hs.astype(jnp.bfloat16), w_dec_ref[...],
                            preferred_element_type=jnp.float32)
                    + b_dec_ref[...]).astype(out_ref.dtype)
    h_out_ref[...] = h
    c_out_ref[...] = c


def make_params(key, input_size, embedding_size, hidden_size, output_size):
    """Deterministic synthetic parameters with PyTorch-native shapes."""
    ks = jax.random.split(key, 7)
    s = 0.1
    return {
        "emb_table": s * jax.random.normal(ks[0], (input_size, embedding_size), jnp.float32),
        "w_ih": s * jax.random.normal(ks[1], (4 * hidden_size, embedding_size), jnp.float32),
        "w_hh": s * jax.random.normal(ks[2], (4 * hidden_size, hidden_size), jnp.float32),
        "b_ih": s * jax.random.normal(ks[3], (4 * hidden_size,), jnp.float32),
        "b_hh": s * jax.random.normal(ks[4], (4 * hidden_size,), jnp.float32),
        "w_dec": s * jax.random.normal(ks[5], (output_size, hidden_size), jnp.float32),
        "b_dec": s * jax.random.normal(ks[6], (output_size,), jnp.float32),
    }


def prepare_kernel_params(params):
    """One-time (cached) kernel-ready weight prep: reorder, transpose, pad, fuse, cast to bf16."""
    V, E = params["emb_table"].shape
    H = params["w_hh"].shape[1]
    O = params["w_dec"].shape[0]
    Hp, Vp, Op = _round_up(H, _LANE), _round_up(V, _LANE), _round_up(O, _LANE)
    f32 = jnp.float32

    def reorder_cols(w):  # (rows, 4H) columns in [i,f,g,o] -> [i,f,o,g], each block padded to Hp
        gi, gf, gg, go = jnp.split(w, 4, axis=1)
        return jnp.concatenate(
            [_pad_to(b, (b.shape[0], Hp)) for b in (gi, gf, go, gg)], axis=1)

    # fused embedding + input-projection table (Embedding -> Linear is one linear map)
    w_xg = params["emb_table"].astype(f32) @ params["w_ih"].T.astype(f32)     # (V, 4H)
    w_xg = _pad_to(reorder_cols(w_xg), (Vp, 4 * Hp)).astype(jnp.bfloat16)     # (Vp, 4Hp)

    w_hh = _pad_to(reorder_cols(params["w_hh"].T.astype(f32)),
                   (Hp, 4 * Hp)).astype(jnp.bfloat16)                          # (Hp, 4Hp)

    bi, bf_, bg, bo = jnp.split((params["b_ih"] + params["b_hh"]).astype(f32), 4)
    b = jnp.concatenate([_pad_to(x, (Hp,)) for x in (bi, bf_, bo, bg)]).reshape(1, 4 * Hp)

    w_dec = _pad_to(params["w_dec"].T.astype(f32), (Hp, Op)).astype(jnp.bfloat16)   # (Hp, Op)
    b_dec = _pad_to(params["b_dec"].astype(f32), (Op,)).reshape(1, Op)              # (1, Op) f32

    kp = {"w_xg": w_xg, "w_hh": w_hh, "b": b, "w_dec": w_dec, "b_dec": b_dec}
    dims = {"H": H, "O": O, "Hp": Hp, "Op": Op}
    return kp, dims


def lstm_forward(tokens, hidden, cell, kp, dims):
    """Equivalent of lstm.forward(input, hidden, cell) for num_layers=1.

    tokens: (S,) int32   hidden, cell: (1, 1, H) float32
    returns (out (S, O), hidden (1, 1, H), cell (1, 1, H))
    """
    # TODO(synk): only num_layers=1 (the module's default) is implemented.
    S = tokens.shape[0]
    H, O, Hp, Op = dims["H"], dims["O"], dims["Hp"], dims["Op"]

    h0 = _pad_to(hidden.reshape(1, H).astype(jnp.float32), (1, Hp))
    c0 = _pad_to(cell.reshape(1, H).astype(jnp.float32), (1, Hp))
    tok = tokens.astype(jnp.int32)

    vmem = pl.BlockSpec(memory_space=pltpu.MemorySpace.VMEM)
    smem = pl.BlockSpec(memory_space=pltpu.MemorySpace.SMEM)

    out_p, h_f, c_f = pl.pallas_call(
        _lstm_kernel,
        out_shape=(
            jax.ShapeDtypeStruct((S, Op), jnp.float32),
            jax.ShapeDtypeStruct((1, Hp), jnp.float32),
            jax.ShapeDtypeStruct((1, Hp), jnp.float32),
        ),
        in_specs=[smem] + [vmem] * 7,
        out_specs=(vmem, vmem, vmem),
    )(tok, kp["w_xg"], kp["w_hh"], kp["b"], kp["w_dec"], kp["b_dec"], h0, c0)

    out = out_p[:, :O]
    return out, h_f[:, :H].reshape(1, 1, H), c_f[:, :H].reshape(1, 1, H)


def _reference_forward(tokens, hidden, cell, params):
    """Pure-JAX f32 reference mirroring the PyTorch forward (original gate order, no padding)."""
    H = hidden.shape[-1]
    emb = params["emb_table"][tokens]
    h = hidden.reshape(1, H)
    c = cell.reshape(1, H)
    hs = []
    for t in range(tokens.shape[0]):
        x_t = emb[t:t + 1]
        gates = x_t @ params["w_ih"].T + h @ params["w_hh"].T + params["b_ih"] + params["b_hh"]
        i = jax.nn.sigmoid(gates[:, 0 * H:1 * H])
        f = jax.nn.sigmoid(gates[:, 1 * H:2 * H])
        g = jnp.tanh(gates[:, 2 * H:3 * H])
        o = jax.nn.sigmoid(gates[:, 3 * H:4 * H])
        c = f * c + i * g
        h = o * jnp.tanh(c)
        hs.append(h)
    hs = jnp.concatenate(hs, axis=0)
    out = hs @ params["w_dec"].T + params["b_dec"]
    return out, h.reshape(1, 1, H), c.reshape(1, 1, H)


if __name__ == "__main__":
    # module hyperparameters
    input_size = 16        # vocab
    embedding_size = 32
    hidden_size = 32
    output_size = 16
    batch_size = 8         # == sequence/chunk length fed through view(-1, 1)
    num_layers = 1

    key = jax.random.PRNGKey(0)
    k_par, k_tok = jax.random.split(key)
    params = make_params(k_par, input_size, embedding_size, hidden_size, output_size)

    # one-time weight prep (cached across calls); per-call work is the kernel + tiny h0/c0 pad.
    kp, dims = prepare_kernel_params(params)
    forward = jax.jit(lambda t, h, c: lstm_forward(t, h, c, kp, dims))

    tokens = jax.random.randint(k_tok, (batch_size,), 0, input_size, dtype=jnp.int32)
    hidden = jnp.zeros((num_layers, 1, hidden_size), jnp.float32)
    cell = jnp.zeros((num_layers, 1, hidden_size), jnp.float32)

    out, h_f, c_f = forward(tokens, hidden, cell)
    jax.block_until_ready((out, h_f, c_f))

    ref_out, ref_h, ref_c = _reference_forward(tokens, hidden, cell, params)
    assert out.shape == (batch_size, output_size)
    assert h_f.shape == (num_layers, 1, hidden_size)
    assert c_f.shape == (num_layers, 1, hidden_size)
    # Matmul operands are bf16 (f32 accumulate), so compare against the f32 reference at
    # bf16-level tolerance (per the perf review's correctness note).
    assert jnp.allclose(out, ref_out, atol=2e-2), jnp.max(jnp.abs(out - ref_out))
    assert jnp.allclose(h_f, ref_h, atol=2e-2), jnp.max(jnp.abs(h_f - ref_h))
    assert jnp.allclose(c_f, ref_c, atol=2e-2), jnp.max(jnp.abs(c_f - ref_c))

    print("KERNEL_OK")
</pallas_src>

<mosaic_0001>
module attributes {stable_mosaic.version = 11 : i64} {
  func.func @_lstm_kernel(%arg0: memref<8xi32, #tpu.memory_space<smem>>, %arg1: memref<128x512xbf16, #tpu.memory_space<vmem>>, %arg2: memref<128x512xbf16, #tpu.memory_space<vmem>>, %arg3: memref<1x512xf32, #tpu.memory_space<vmem>>, %arg4: memref<128x128xbf16, #tpu.memory_space<vmem>>, %arg5: memref<1x128xf32, #tpu.memory_space<vmem>>, %arg6: memref<1x128xf32, #tpu.memory_space<vmem>>, %arg7: memref<1x128xf32, #tpu.memory_space<vmem>>, %arg8: memref<8x128xf32, #tpu.memory_space<vmem>>, %arg9: memref<1x128xf32, #tpu.memory_space<vmem>>, %arg10: memref<1x128xf32, #tpu.memory_space<vmem>>) attributes {dimension_semantics = [], scalar_prefetch = 0 : i64, scratch_operands = 0 : i64, tpu.core_type = #tpu.core_type<tc>} {
    %0 = tpu.iota {dimensions = array<i32: 1>} : vector<1x128xi32>
    %c0 = arith.constant 0 : index
    %1 = memref.load %arg0[%c0] : memref<8xi32, #tpu.memory_space<smem>>
    %2 = vector.broadcast %1 : i32 to vector<1x128xi32>
    %3 = arith.cmpi eq, %0, %2 : vector<1x128xi32>
    %cst = arith.constant 1.000000e+00 : f32
    %cst_0 = arith.constant 0.000000e+00 : f32
    %4 = vector.broadcast %cst : f32 to vector<1x128xf32>
    %5 = vector.broadcast %cst_0 : f32 to vector<1x128xf32>
    %6 = arith.select %3, %4, %5 : vector<1x128xi1>, vector<1x128xf32>
    %c1 = arith.constant 1 : index
    %7 = memref.load %arg0[%c1] : memref<8xi32, #tpu.memory_space<smem>>
    %8 = vector.broadcast %7 : i32 to vector<1x128xi32>
    %9 = arith.cmpi eq, %0, %8 : vector<1x128xi32>
    %cst_1 = arith.constant 1.000000e+00 : f32
    %cst_2 = arith.constant 0.000000e+00 : f32
    %10 = vector.broadcast %cst_1 : f32 to vector<1x128xf32>
    %11 = vector.broadcast %cst_2 : f32 to vector<1x128xf32>
    %12 = arith.select %9, %10, %11 : vector<1x128xi1>, vector<1x128xf32>
    %c2 = arith.constant 2 : index
    %13 = memref.load %arg0[%c2] : memref<8xi32, #tpu.memory_space<smem>>
    %14 = vector.broadcast %13 : i32 to vector<1x128xi32>
    %15 = arith.cmpi eq, %0, %14 : vector<1x128xi32>
    %cst_3 = arith.constant 1.000000e+00 : f32
    %cst_4 = arith.constant 0.000000e+00 : f32
    %16 = vector.broadcast %cst_3 : f32 to vector<1x128xf32>
    %17 = vector.broadcast %cst_4 : f32 to vector<1x128xf32>
    %18 = arith.select %15, %16, %17 : vector<1x128xi1>, vector<1x128xf32>
    %c3 = arith.constant 3 : index
    %19 = memref.load %arg0[%c3] : memref<8xi32, #tpu.memory_space<smem>>
    %20 = vector.broadcast %19 : i32 to vector<1x128xi32>
    %21 = arith.cmpi eq, %0, %20 : vector<1x128xi32>
    %cst_5 = arith.constant 1.000000e+00 : f32
    %cst_6 = arith.constant 0.000000e+00 : f32
    %22 = vector.broadcast %cst_5 : f32 to vector<1x128xf32>
    %23 = vector.broadcast %cst_6 : f32 to vector<1x128xf32>
    %24 = arith.select %21, %22, %23 : vector<1x128xi1>, vector<1x128xf32>
    %c4 = arith.constant 4 : index
    %25 = memref.load %arg0[%c4] : memref<8xi32, #tpu.memory_space<smem>>
    %26 = vector.broadcast %25 : i32 to vector<1x128xi32>
    %27 = arith.cmpi eq, %0, %26 : vector<1x128xi32>
    %cst_7 = arith.constant 1.000000e+00 : f32
    %cst_8 = arith.constant 0.000000e+00 : f32
    %28 = vector.broadcast %cst_7 : f32 to vector<1x128xf32>
    %29 = vector.broadcast %cst_8 : f32 to vector<1x128xf32>
    %30 = arith.select %27, %28, %29 : vector<1x128xi1>, vector<1x128xf32>
    %c5 = arith.constant 5 : index
    %31 = memref.load %arg0[%c5] : memref<8xi32, #tpu.memory_space<smem>>
    %32 = vector.broadcast %31 : i32 to vector<1x128xi32>
    %33 = arith.cmpi eq, %0, %32 : vector<1x128xi32>
    %cst_9 = arith.constant 1.000000e+00 : f32
    %cst_10 = arith.constant 0.000000e+00 : f32
    %34 = vector.broadcast %cst_9 : f32 to vector<1x128xf32>
    %35 = vector.broadcast %cst_10 : f32 to vector<1x128xf32>
    %36 = arith.select %33, %34, %35 : vector<1x128xi1>, vector<1x128xf32>
    %c6 = arith.constant 6 : index
    %37 = memref.load %arg0[%c6] : memref<8xi32, #tpu.memory_space<smem>>
    %38 = vector.broadcast %37 : i32 to vector<1x128xi32>
    %39 = arith.cmpi eq, %0, %38 : vector<1x128xi32>
    %cst_11 = arith.constant 1.000000e+00 : f32
    %cst_12 = arith.constant 0.000000e+00 : f32
    %40 = vector.broadcast %cst_11 : f32 to vector<1x128xf32>
    %41 = vector.broadcast %cst_12 : f32 to vector<1x128xf32>
    %42 = arith.select %39, %40, %41 : vector<1x128xi1>, vector<1x128xf32>
    %c7 = arith.constant 7 : index
    %43 = memref.load %arg0[%c7] : memref<8xi32, #tpu.memory_space<smem>>
    %44 = vector.broadcast %43 : i32 to vector<1x128xi32>
    %45 = arith.cmpi eq, %0, %44 : vector<1x128xi32>
    %cst_13 = arith.constant 1.000000e+00 : f32
    %cst_14 = arith.constant 0.000000e+00 : f32
    %46 = vector.broadcast %cst_13 : f32 to vector<1x128xf32>
    %47 = vector.broadcast %cst_14 : f32 to vector<1x128xf32>
    %48 = arith.select %45, %46, %47 : vector<1x128xi1>, vector<1x128xf32>
    %49 = tpu.concatenate %6, %12, %18, %24, %30, %36, %42, %48 in 0 : vector<1x128xf32>, vector<1x128xf32>, vector<1x128xf32>, vector<1x128xf32>, vector<1x128xf32>, vector<1x128xf32>, vector<1x128xf32>, vector<1x128xf32> -> vector<8x128xf32>
    %50 = arith.truncf %49 : vector<8x128xf32> to vector<8x128xbf16>
    %c0_15 = arith.constant 0 : index
    %c0_16 = arith.constant 0 : index
    %51 = vector.load %arg1[%c0_15, %c0_16] : memref<128x512xbf16, #tpu.memory_space<vmem>>, vector<128x512xbf16>
    %cst_17 = arith.constant dense<0.000000e+00> : vector<8x512xf32>
    %52 = tpu.matmul %50, %51, %cst_17 {dimension_numbers = #tpu.dot_dimension_numbers<[1], [0], [0], [1], [0, 0, 1, 1], [], []>} : vector<8x128xbf16>, vector<128x512xbf16>, vector<8x512xf32> -> vector<8x512xf32>
    %c0_18 = arith.constant 0 : index
    %c0_19 = arith.constant 0 : index
    %53 = vector.load %arg3[%c0_18, %c0_19] : memref<1x512xf32, #tpu.memory_space<vmem>>, vector<1x512xf32>
    %54 = vector.broadcast %53 : vector<1x512xf32> to vector<8x512xf32>
    %55 = arith.addf %52, %54 : vector<8x512xf32>
    %c0_20 = arith.constant 0 : index
    %c0_21 = arith.constant 0 : index
    %56 = vector.load %arg2[%c0_20, %c0_21] : memref<128x512xbf16, #tpu.memory_space<vmem>>, vector<128x512xbf16>
    %c0_22 = arith.constant 0 : index
    %c0_23 = arith.constant 0 : index
    %57 = vector.load %arg6[%c0_22, %c0_23] : memref<1x128xf32, #tpu.memory_space<vmem>>, vector<1x128xf32>
    %c0_24 = arith.constant 0 : index
    %c0_25 = arith.constant 0 : index
    %58 = vector.load %arg7[%c0_24, %c0_25] : memref<1x128xf32, #tpu.memory_space<vmem>>, vector<1x128xf32>
    %59 = vector.extract_strided_slice %55 {offsets = [0, 0], sizes = [1, 512], strides = [1, 1]} : vector<8x512xf32> to vector<1x512xf32>
    %60 = arith.truncf %57 : vector<1x128xf32> to vector<1x128xbf16>
    %cst_26 = arith.constant dense<0.000000e+00> : vector<1x512xf32>
    %61 = tpu.matmul %60, %56, %cst_26 {dimension_numbers = #tpu.dot_dimension_numbers<[1], [0], [0], [1], [0, 0, 1, 1], [], []>} : vector<1x128xbf16>, vector<128x512xbf16>, vector<1x512xf32> -> vector<1x512xf32>
    %62 = arith.addf %59, %61 : vector<1x512xf32>
    %63 = vector.extract_strided_slice %62 {offsets = [0, 0], sizes = [1, 384], strides = [1, 1]} : vector<1x512xf32> to vector<1x384xf32>
    %64 = arith.negf %63 : vector<1x384xf32>
    %65 = math.exp %64 : vector<1x384xf32>
    %cst_27 = arith.constant 1.000000e+00 : f32
    %66 = vector.broadcast %cst_27 : f32 to vector<1x384xf32>
    %67 = arith.addf %66, %65 : vector<1x384xf32>
    %68 = arith.divf %66, %67 : vector<1x384xf32>
    %69 = vector.extract_strided_slice %68 {offsets = [0, 0], sizes = [1, 128], strides = [1, 1]} : vector<1x384xf32> to vector<1x128xf32>
    %70 = vector.extract_strided_slice %68 {offsets = [0, 128], sizes = [1, 128], strides = [1, 1]} : vector<1x384xf32> to vector<1x128xf32>
    %71 = vector.extract_strided_slice %68 {offsets = [0, 256], sizes = [1, 128], strides = [1, 1]} : vector<1x384xf32> to vector<1x128xf32>
    %72 = vector.extract_strided_slice %62 {offsets = [0, 384], sizes = [1, 128], strides = [1, 1]} : vector<1x512xf32> to vector<1x128xf32>
    %73 = math.tanh %72 : vector<1x128xf32>
    %74 = arith.mulf %70, %58 : vector<1x128xf32>
    %75 = arith.mulf %69, %73 : vector<1x128xf32>
    %76 = arith.addf %74, %75 : vector<1x128xf32>
    %77 = math.tanh %76 : vector<1x128xf32>
    %78 = arith.mulf %71, %77 : vector<1x128xf32>
    %79 = vector.extract_strided_slice %55 {offsets = [1, 0], sizes = [1, 512], strides = [1, 1]} : vector<8x512xf32> to vector<1x512xf32>
    %80 = arith.truncf %78 : vector<1x128xf32> to vector<1x128xbf16>
    %cst_28 = arith.constant dense<0.000000e+00> : vector<1x512xf32>
    %81 = tpu.matmul %80, %56, %cst_28 {dimension_numbers = #tpu.dot_dimension_numbers<[1], [0], [0], [1], [0, 0, 1, 1], [], []>} : vector<1x128xbf16>, vector<128x512xbf16>, vector<1x512xf32> -> vector<1x512xf32>
    %82 = arith.addf %79, %81 : vector<1x512xf32>
    %83 = vector.extract_strided_slice %82 {offsets = [0, 0], sizes = [1, 384], strides = [1, 1]} : vector<1x512xf32> to vector<1x384xf32>
    %84 = arith.negf %83 : vector<1x384xf32>
    %85 = math.exp %84 : vector<1x384xf32>
    %cst_29 = arith.constant 1.000000e+00 : f32
    %86 = vector.broadcast %cst_29 : f32 to vector<1x384xf32>
    %87 = arith.addf %86, %85 : vector<1x384xf32>
    %88 = arith.divf %86, %87 : vector<1x384xf32>
    %89 = vector.extract_strided_slice %88 {offsets = [0, 0], sizes = [1, 128], strides = [1, 1]} : vector<1x384xf32> to vector<1x128xf32>
    %90 = vector.extract_strided_slice %88 {offsets = [0, 128], sizes = [1, 128], strides = [1, 1]} : vector<1x384xf32> to vector<1x128xf32>
    %91 = vector.extract_strided_slice %88 {offsets = [0, 256], sizes = [1, 128], strides = [1, 1]} : vector<1x384xf32> to vector<1x128xf32>
    %92 = vector.extract_strided_slice %82 {offsets = [0, 384], sizes = [1, 128], strides = [1, 1]} : vector<1x512xf32> to vector<1x128xf32>
    %93 = math.tanh %92 : vector<1x128xf32>
    %94 = arith.mulf %90, %76 : vector<1x128xf32>
    %95 = arith.mulf %89, %93 : vector<1x128xf32>
    %96 = arith.addf %94, %95 : vector<1x128xf32>
    %97 = math.tanh %96 : vector<1x128xf32>
    %98 = arith.mulf %91, %97 : vector<1x128xf32>
    %99 = vector.extract_strided_slice %55 {offsets = [2, 0], sizes = [1, 512], strides = [1, 1]} : vector<8x512xf32> to vector<1x512xf32>
    %100 = arith.truncf %98 : vector<1x128xf32> to vector<1x128xbf16>
    %cst_30 = arith.constant dense<0.000000e+00> : vector<1x512xf32>
    %101 = tpu.matmul %100, %56, %cst_30 {dimension_numbers = #tpu.dot_dimension_numbers<[1], [0], [0], [1], [0, 0, 1, 1], [], []>} : vector<1x128xbf16>, vector<128x512xbf16>, vector<1x512xf32> -> vector<1x512xf32>
    %102 = arith.addf %99, %101 : vector<1x512xf32>
    %103 = vector.extract_strided_slice %102 {offsets = [0, 0], sizes = [1, 384], strides = [1, 1]} : vector<1x512xf32> to vector<1x384xf32>
    %104 = arith.negf %103 : vector<1x384xf32>
    %105 = math.exp %104 : vector<1x384xf32>
    %cst_31 = arith.constant 1.000000e+00 : f32
    %106 = vector.broadcast %cst_31 : f32 to vector<1x384xf32>
    %107 = arith.addf %106, %105 : vector<1x384xf32>
    %108 = arith.divf %106, %107 : vector<1x384xf32>
    %109 = vector.extract_strided_slice %108 {offsets = [0, 0], sizes = [1, 128], strides = [1, 1]} : vector<1x384xf32> to vector<1x128xf32>
    %110 = vector.extract_strided_slice %108 {offsets = [0, 128], sizes = [1, 128], strides = [1, 1]} : vector<1x384xf32> to vector<1x128xf32>
    %111 = vector.extract_strided_slice %108 {offsets = [0, 256], sizes = [1, 128], strides = [1, 1]} : vector<1x384xf32> to vector<1x128xf32>
    %112 = vector.extract_strided_slice %102 {offsets = [0, 384], sizes = [1, 128], strides = [1, 1]} : vector<1x512xf32> to vector<1x128xf32>
    %113 = math.tanh %112 : vector<1x128xf32>
    %114 = arith.mulf %110, %96 : vector<1x128xf32>
    %115 = arith.mulf %109, %113 : vector<1x128xf32>
    %116 = arith.addf %114, %115 : vector<1x128xf32>
    %117 = math.tanh %116 : vector<1x128xf32>
    %118 = arith.mulf %111, %117 : vector<1x128xf32>
    %119 = vector.extract_strided_slice %55 {offsets = [3, 0], sizes = [1, 512], strides = [1, 1]} : vector<8x512xf32> to vector<1x512xf32>
    %120 = arith.truncf %118 : vector<1x128xf32> to vector<1x128xbf16>
    %cst_32 = arith.constant dense<0.000000e+00> : vector<1x512xf32>
    %121 = tpu.matmul %120, %56, %cst_32 {dimension_numbers = #tpu.dot_dimension_numbers<[1], [0], [0], [1], [0, 0, 1, 1], [], []>} : vector<1x128xbf16>, vector<128x512xbf16>, vector<1x512xf32> -> vector<1x512xf32>
    %122 = arith.addf %119, %121 : vector<1x512xf32>
    %123 = vector.extract_strided_slice %122 {offsets = [0, 0], sizes = [1, 384], strides = [1, 1]} : vector<1x512xf32> to vector<1x384xf32>
    %124 = arith.negf %123 : vector<1x384xf32>
    %125 = math.exp %124 : vector<1x384xf32>
    %cst_33 = arith.constant 1.000000e+00 : f32
    %126 = vector.broadcast %cst_33 : f32 to vector<1x384xf32>
    %127 = arith.addf %126, %125 : vector<1x384xf32>
    %128 = arith.divf %126, %127 : vector<1x384xf32>
    %129 = vector.extract_strided_slice %128 {offsets = [0, 0], sizes = [1, 128], strides = [1, 1]} : vector<1x384xf32> to vector<1x128xf32>
    %130 = vector.extract_strided_slice %128 {offsets = [0, 128], sizes = [1, 128], strides = [1, 1]} : vector<1x384xf32> to vector<1x128xf32>
    %131 = vector.extract_strided_slice %128 {offsets = [0, 256], sizes = [1, 128], strides = [1, 1]} : vector<1x384xf32> to vector<1x128xf32>
    %132 = vector.extract_strided_slice %122 {offsets = [0, 384], sizes = [1, 128], strides = [1, 1]} : vector<1x512xf32> to vector<1x128xf32>
    %133 = math.tanh %132 : vector<1x128xf32>
    %134 = arith.mulf %130, %116 : vector<1x128xf32>
    %135 = arith.mulf %129, %133 : vector<1x128xf32>
    %136 = arith.addf %134, %135 : vector<1x128xf32>
    %137 = math.tanh %136 : vector<1x128xf32>
    %138 = arith.mulf %131, %137 : vector<1x128xf32>
    %139 = vector.extract_strided_slice %55 {offsets = [4, 0], sizes = [1, 512], strides = [1, 1]} : vector<8x512xf32> to vector<1x512xf32>
    %140 = arith.truncf %138 : vector<1x128xf32> to vector<1x128xbf16>
    %cst_34 = arith.constant dense<0.000000e+00> : vector<1x512xf32>
    %141 = tpu.matmul %140, %56, %cst_34 {dimension_numbers = #tpu.dot_dimension_numbers<[1], [0], [0], [1], [0, 0, 1, 1], [], []>} : vector<1x128xbf16>, vector<128x512xbf16>, vector<1x512xf32> -> vector<1x512xf32>
    %142 = arith.addf %139, %141 : vector<1x512xf32>
    %143 = vector.extract_strided_slice %142 {offsets = [0, 0], sizes = [1, 384], strides = [1, 1]} : vector<1x512xf32> to vector<1x384xf32>
    %144 = arith.negf %143 : vector<1x384xf32>
    %145 = math.exp %144 : vector<1x384xf32>
    %cst_35 = arith.constant 1.000000e+00 : f32
    %146 = vector.broadcast %cst_35 : f32 to vector<1x384xf32>
    %147 = arith.addf %146, %145 : vector<1x384xf32>
    %148 = arith.divf %146, %147 : vector<1x384xf32>
    %149 = vector.extract_strided_slice %148 {offsets = [0, 0], sizes = [1, 128], strides = [1, 1]} : vector<1x384xf32> to vector<1x128xf32>
    %150 = vector.extract_strided_slice %148 {offsets = [0, 128], sizes = [1, 128], strides = [1, 1]} : vector<1x384xf32> to vector<1x128xf32>
    %151 = vector.extract_strided_slice %148 {offsets = [0, 256], sizes = [1, 128], strides = [1, 1]} : vector<1x384xf32> to vector<1x128xf32>
    %152 = vector.extract_strided_slice %142 {offsets = [0, 384], sizes = [1, 128], strides = [1, 1]} : vector<1x512xf32> to vector<1x128xf32>
    %153 = math.tanh %152 : vector<1x128xf32>
    %154 = arith.mulf %150, %136 : vector<1x128xf32>
    %155 = arith.mulf %149, %153 : vector<1x128xf32>
    %156 = arith.addf %154, %155 : vector<1x128xf32>
    %157 = math.tanh %156 : vector<1x128xf32>
    %158 = arith.mulf %151, %157 : vector<1x128xf32>
    %159 = vector.extract_strided_slice %55 {offsets = [5, 0], sizes = [1, 512], strides = [1, 1]} : vector<8x512xf32> to vector<1x512xf32>
    %160 = arith.truncf %158 : vector<1x128xf32> to vector<1x128xbf16>
    %cst_36 = arith.constant dense<0.000000e+00> : vector<1x512xf32>
    %161 = tpu.matmul %160, %56, %cst_36 {dimension_numbers = #tpu.dot_dimension_numbers<[1], [0], [0], [1], [0, 0, 1, 1], [], []>} : vector<1x128xbf16>, vector<128x512xbf16>, vector<1x512xf32> -> vector<1x512xf32>
    %162 = arith.addf %159, %161 : vector<1x512xf32>
    %163 = vector.extract_strided_slice %162 {offsets = [0, 0], sizes = [1, 384], strides = [1, 1]} : vector<1x512xf32> to vector<1x384xf32>
    %164 = arith.negf %163 : vector<1x384xf32>
    %165 = math.exp %164 : vector<1x384xf32>
    %cst_37 = arith.constant 1.000000e+00 : f32
    %166 = vector.broadcast %cst_37 : f32 to vector<1x384xf32>
    %167 = arith.addf %166, %165 : vector<1x384xf32>
    %168 = arith.divf %166, %167 : vector<1x384xf32>
    %169 = vector.extract_strided_slice %168 {offsets = [0, 0], sizes = [1, 128], strides = [1, 1]} : vector<1x384xf32> to vector<1x128xf32>
    %170 = vector.extract_strided_slice %168 {offsets = [0, 128], sizes = [1, 128], strides = [1, 1]} : vector<1x384xf32> to vector<1x128xf32>
    %171 = vector.extract_strided_slice %168 {offsets = [0, 256], sizes = [1, 128], strides = [1, 1]} : vector<1x384xf32> to vector<1x128xf32>
    %172 = vector.extract_strided_slice %162 {offsets = [0, 384], sizes = [1, 128], strides = [1, 1]} : vector<1x512xf32> to vector<1x128xf32>
    %173 = math.tanh %172 : vector<1x128xf32>
    %174 = arith.mulf %170, %156 : vector<1x128xf32>
    %175 = arith.mulf %169, %173 : vector<1x128xf32>
    %176 = arith.addf %174, %175 : vector<1x128xf32>
    %177 = math.tanh %176 : vector<1x128xf32>
    %178 = arith.mulf %171, %177 : vector<1x128xf32>
    %179 = vector.extract_strided_slice %55 {offsets = [6, 0], sizes = [1, 512], strides = [1, 1]} : vector<8x512xf32> to vector<1x512xf32>
    %180 = arith.truncf %178 : vector<1x128xf32> to vector<1x128xbf16>
    %cst_38 = arith.constant dense<0.000000e+00> : vector<1x512xf32>
    %181 = tpu.matmul %180, %56, %cst_38 {dimension_numbers = #tpu.dot_dimension_numbers<[1], [0], [0], [1], [0, 0, 1, 1], [], []>} : vector<1x128xbf16>, vector<128x512xbf16>, vector<1x512xf32> -> vector<1x512xf32>
    %182 = arith.addf %179, %181 : vector<1x512xf32>
    %183 = vector.extract_strided_slice %182 {offsets = [0, 0], sizes = [1, 384], strides = [1, 1]} : vector<1x512xf32> to vector<1x384xf32>
    %184 = arith.negf %183 : vector<1x384xf32>
    %185 = math.exp %184 : vector<1x384xf32>
    %cst_39 = arith.constant 1.000000e+00 : f32
    %186 = vector.broadcast %cst_39 : f32 to vector<1x384xf32>
    %187 = arith.addf %186, %185 : vector<1x384xf32>
    %188 = arith.divf %186, %187 : vector<1x384xf32>
    %189 = vector.extract_strided_slice %188 {offsets = [0, 0], sizes = [1, 128], strides = [1, 1]} : vector<1x384xf32> to vector<1x128xf32>
    %190 = vector.extract_strided_slice %188 {offsets = [0, 128], sizes = [1, 128], strides = [1, 1]} : vector<1x384xf32> to vector<1x128xf32>
    %191 = vector.extract_strided_slice %188 {offsets = [0, 256], sizes = [1, 128], strides = [1, 1]} : vector<1x384xf32> to vector<1x128xf32>
    %192 = vector.extract_strided_slice %182 {offsets = [0, 384], sizes = [1, 128], strides = [1, 1]} : vector<1x512xf32> to vector<1x128xf32>
    %193 = math.tanh %192 : vector<1x128xf32>
    %194 = arith.mulf %190, %176 : vector<1x128xf32>
    %195 = arith.mulf %189, %193 : vector<1x128xf32>
    %196 = arith.addf %194, %195 : vector<1x128xf32>
    %197 = math.tanh %196 : vector<1x128xf32>
    %198 = arith.mulf %191, %197 : vector<1x128xf32>
    %199 = vector.extract_strided_slice %55 {offsets = [7, 0], sizes = [1, 512], strides = [1, 1]} : vector<8x512xf32> to vector<1x512xf32>
    %200 = arith.truncf %198 : vector<1x128xf32> to vector<1x128xbf16>
    %cst_40 = arith.constant dense<0.000000e+00> : vector<1x512xf32>
    %201 = tpu.matmul %200, %56, %cst_40 {dimension_numbers = #tpu.dot_dimension_numbers<[1], [0], [0], [1], [0, 0, 1, 1], [], []>} : vector<1x128xbf16>, vector<128x512xbf16>, vector<1x512xf32> -> vector<1x512xf32>
    %202 = arith.addf %199, %201 : vector<1x512xf32>
    %203 = vector.extract_strided_slice %202 {offsets = [0, 0], sizes = [1, 384], strides = [1, 1]} : vector<1x512xf32> to vector<1x384xf32>
    %204 = arith.negf %203 : vector<1x384xf32>
    %205 = math.exp %204 : vector<1x384xf32>
    %cst_41 = arith.constant 1.000000e+00 : f32
    %206 = vector.broadcast %cst_41 : f32 to vector<1x384xf32>
    %207 = arith.addf %206, %205 : vector<1x384xf32>
    %208 = arith.divf %206, %207 : vector<1x384xf32>
    %209 = vector.extract_strided_slice %208 {offsets = [0, 0], sizes = [1, 128], strides = [1, 1]} : vector<1x384xf32> to vector<1x128xf32>
    %210 = vector.extract_strided_slice %208 {offsets = [0, 128], sizes = [1, 128], strides = [1, 1]} : vector<1x384xf32> to vector<1x128xf32>
    %211 = vector.extract_strided_slice %208 {offsets = [0, 256], sizes = [1, 128], strides = [1, 1]} : vector<1x384xf32> to vector<1x128xf32>
    %212 = vector.extract_strided_slice %202 {offsets = [0, 384], sizes = [1, 128], strides = [1, 1]} : vector<1x512xf32> to vector<1x128xf32>
    %213 = math.tanh %212 : vector<1x128xf32>
    %214 = arith.mulf %210, %196 : vector<1x128xf32>
    %215 = arith.mulf %209, %213 : vector<1x128xf32>
    %216 = arith.addf %214, %215 : vector<1x128xf32>
    %217 = math.tanh %216 : vector<1x128xf32>
    %218 = arith.mulf %211, %217 : vector<1x128xf32>
    %219 = tpu.concatenate %78, %98, %118, %138, %158, %178, %198, %218 in 0 : vector<1x128xf32>, vector<1x128xf32>, vector<1x128xf32>, vector<1x128xf32>, vector<1x128xf32>, vector<1x128xf32>, vector<1x128xf32>, vector<1x128xf32> -> vector<8x128xf32>
    %220 = arith.truncf %219 : vector<8x128xf32> to vector<8x128xbf16>
    %c0_42 = arith.constant 0 : index
    %c0_43 = arith.constant 0 : index
    %221 = vector.load %arg4[%c0_42, %c0_43] : memref<128x128xbf16, #tpu.memory_space<vmem>>, vector<128x128xbf16>
    %cst_44 = arith.constant dense<0.000000e+00> : vector<8x128xf32>
    %222 = tpu.matmul %220, %221, %cst_44 {dimension_numbers = #tpu.dot_dimension_numbers<[1], [0], [0], [1], [0, 0, 1, 1], [], []>} : vector<8x128xbf16>, vector<128x128xbf16>, vector<8x128xf32> -> vector<8x128xf32>
    %c0_45 = arith.constant 0 : index
    %c0_46 = arith.constant 0 : index
    %223 = vector.load %arg5[%c0_45, %c0_46] : memref<1x128xf32, #tpu.memory_space<vmem>>, vector<1x128xf32>
    %224 = vector.broadcast %223 : vector<1x128xf32> to vector<8x128xf32>
    %225 = arith.addf %222, %224 : vector<8x128xf32>
    %c0_47 = arith.constant 0 : index
    %c0_48 = arith.constant 0 : index
    %226 = vector.load %arg8[%c0_47, %c0_48] : memref<8x128xf32, #tpu.memory_space<vmem>>, vector<8x128xf32>
    tpu.vector_store %arg8[%c0_47, %c0_48], %225 {strides = array<i32>} : memref<8x128xf32, #tpu.memory_space<vmem>>, vector<8x128xf32>,
    %c0_49 = arith.constant 0 : index
    %c0_50 = arith.constant 0 : index
    %227 = vector.load %arg9[%c0_49, %c0_50] : memref<1x128xf32, #tpu.memory_space<vmem>>, vector<1x128xf32>
    tpu.vector_store %arg9[%c0_49, %c0_50], %218 {strides = array<i32>} : memref<1x128xf32, #tpu.memory_space<vmem>>, vector<1x128xf32>,
    %c0_51 = arith.constant 0 : index
    %c0_52 = arith.constant 0 : index
    %228 = vector.load %arg10[%c0_51, %c0_52] : memref<1x128xf32, #tpu.memory_space<vmem>>, vector<1x128xf32>
    tpu.vector_store %arg10[%c0_51, %c0_52], %216 {strides = array<i32>} : memref<1x128xf32, #tpu.memory_space<vmem>>, vector<1x128xf32>,
    return
  }
}

</mosaic_0001>

<bundles_post_ra>
// kernel: _lambda_.1
= control target key start
LH: loop header
LB: loop body
LE: loop exit
PB: predicated region body
PF: predicated region fallthrough
CT: control target
= control target key end

     0   :  { %16 = vsyncpa [#allocation5], 0  ;;  %s3002_s0 = inlined_call_operand.vmem [shape: s32[8], index: 0, kind: input, shape index: {}]   ;;  %s3003_s1 = inlined_call_operand.hbm [shape: bf16[128,512], index: 1, kind: input, shape index: {}]   ;;  %s3004_s2 = inlined_call_operand.hbm [shape: bf16[128,512], index: 2, kind: input, shape index: {}]   ;;  %s3005_s3 = inlined_call_operand.vmem [shape: f32[1,512], index: 3, kind: input, shape index: {}]   ;;  %s3006_s4 = inlined_call_operand.hbm [shape: bf16[128,128], index: 4, kind: input, shape index: {}]   ;;  %s3007_s5 = inlined_call_operand.vmem [shape: f32[1,128], index: 5, kind: input, shape index: {}]   ;;  %s3008_s6 = inlined_call_operand.vmem [shape: f32[1,128], index: 6, kind: input, shape index: {}]   ;;  %s3009_s7 = inlined_call_operand.vmem [shape: f32[1,128], index: 7, kind: input, shape index: {}]   ;;  %s3010_s8 = inlined_call_operand.hbm [shape: f32[8,128], index: 8, kind: output, shape index: {0}]   ;;  %s3011_s9 = inlined_call_operand.vmem [shape: f32[1,128], index: 9, kind: output, shape index: {1}]   ;;  %s3012_s10 = inlined_call_operand.vmem [shape: f32[1,128], index: 10, kind: output, shape index: {2}]  }
   0x1   :  { %17 = vsyncpa [#allocation3], 0 }
   0x2   :  { %18 = vsyncpa [#allocation8], 0 }
   0x3   :  { %19 = vsyncpa [#allocation4], 0  ;;  %s46_s15 = sshll.u32 %s3004_s2, 4  ;;  %s2443_s16 = smov [#allocation7]   ;;  %s47_s15 = int_to_ptr.hbm [resolvable:$true] %s46_s15 }
   0x4   :  { %s48_s17 = sshll.u32 %s2443_s16, 4  ;;  %s25_s20 = sshll.u32 %s3002_s0, 4  ;;  %s49_s17 = int_to_ptr.vmem [resolvable:$true] %s48_s17  ;;  %s26_s20 = int_to_ptr.vmem [resolvable:$true] %s25_s20 }
   0x5   :  { %s2444_s21 = smov 256   ;;  %s2445_s22 = smov 16  }
   0x6   :  { %54 = dma.hbm_to_vmem [thread:$0]  %s47_s15, 4096, %s49_s17, [#allocation8], %s2444_s21, %s2444_s21, %s2445_s22  }
   0x7   :  { %s2446_s23 = smov [#allocation2]   ;;  %s33_s26 = sshll.u32 %s3003_s1, 4  ;;  %s34_s26 = int_to_ptr.hbm [resolvable:$true] %s33_s26 }
   0x8   :  { %28 = dma.vmem_to_smem %s26_s20, 16, %s2446_s23, [#allocation5]  }
   0x9   :  { %s2447_s2 = smov [#allocation6]   ;;  %s61_s30 = sshll.u32 %s3006_s4, 4  ;;  %s62_s30 = int_to_ptr.hbm [resolvable:$true] %s61_s30 }
   0xa   :  { %s35_s27 = sshll.u32 %s2447_s2, 4  ;;  %s2448_s0 = smov [#allocation9]   ;;  %s36_s27 = int_to_ptr.vmem [resolvable:$true] %s35_s27 }
   0xb   :  { %41 = dma.hbm_to_vmem [thread:$0]  %s34_s26, 4096, %s36_s27, [#allocation3], %s2444_s21, %s2444_s21, %s2445_s22  }
   0xc   :  { %s63_s11 = sshll.u32 %s2448_s0, 4  ;;  %s2449_s12 = smov 64   ;;  %s64_s11 = int_to_ptr.vmem [resolvable:$true] %s63_s11 }
   0xd   :  { %s2450_s13 = smov 4  }
   0xe   :  { %69 = dma.hbm_to_vmem [thread:$0]  %s62_s30, 1024, %s64_s11, [#allocation8], %s2449_s12, %s2449_s12, %s2450_s13  }
   0xf   :  { %2435 = dma.done.wait [#allocation5], 16  }
  0x10   :  { %2436 = vsyncadd [#allocation5], 4294967280 }
  0x11   :  { %2437 = dma.done.wait [#allocation3], 4096  }
  0x12   :  { %2438 = vsyncadd [#allocation3], 4294963200 }
  0x13   :  { %2439 = dma.done.wait [#allocation8], 5120  }
  0x14   :  { %2440 = vsyncadd [#allocation8], 4294962176 }
  0x15   :  { %92 = sfence }
  0x16   :  { %v1918_v0 = vld [vmem:[#allocation6 + $0xe0] sm:$0xf]  ;;  %v2146_v1 = vld [vmem:[#allocation6 + $0xec] sm:$0xf0]  ;;  %v2144_v2 = vld [vmem:[#allocation6 + $0xe4] sm:$0xf] }
  0x17   :  { %v1919_v3 = vor.u32 %v2146_v1, %v1918_v0  ;;  %v1920_v4 = vld [vmem:[#allocation6 + $0xf0] sm:$0xf0]  ;;  %v1926_v5 = vld [vmem:[#allocation6 + $0xe8] sm:$0xf]  ;;  %v2147_v6 = vld [vmem:[#allocation6 + $0xf4] sm:$0xf0] }
  0x18   :  { %v1923_v7 = vor.u32 %v2144_v2, %v1920_v4  ;;  %v1927_v8 = vor.u32 %v2147_v6, %v1926_v5  ;;  %v2145_v9 = vld [vmem:[#allocation6 + $0xec] sm:$0xf]  ;;  %v1928_v10 = vld [vmem:[#allocation6 + $0xf8] sm:$0xf0]  ;;  %v1902_v11 = vld [vmem:[#allocation6 + $0xc0] sm:$0xf] }
  0x19   :  { %344 = vmatpush.bf16.msra.mxu0 %v1919_v3  ;;  %v1931_v12 = vor.u32 %v2145_v9, %v1928_v10  ;;  %v2142_v13 = vld [vmem:[#allocation6 + $0xcc] sm:$0xf0]  ;;  %v2140_v14 = vld [vmem:[#allocation6 + $0xc4] sm:$0xf]  ;;  %v1904_v15 = vld [vmem:[#allocation6 + $0xd0] sm:$0xf0] }
  0x1a   :  { %357 = vmatpush.bf16.msra.mxu1 %v1923_v7  ;;  %370 = vmatpush.bf16.msra.mxu2 %v1927_v8  ;;  %v1903_v16 = vor.u32 %v2142_v13, %v1902_v11  ;;  %v1907_v17 = vor.u32 %v2140_v14, %v1904_v15  ;;  %v1910_v18 = vld [vmem:[#allocation6 + $0xc8] sm:$0xf]  ;;  %v2143_v19 = vld [vmem:[#allocation6 + $0xd4] sm:$0xf0]  ;;  %v2141_v20 = vld [vmem:[#allocation6 + $0xcc] sm:$0xf] }
  0x1b   :  { %383 = vmatpush.bf16.msra.mxu3 %v1931_v12  ;;  %v1911_v21 = vor.u32 %v2143_v19, %v1910_v18  ;;  %v1912_v22 = vld [vmem:[#allocation6 + $0xd8] sm:$0xf0]  ;;  %v1886_v23 = vld [vmem:[#allocation6 + $0xa0] sm:$0xf]  ;;  %v2138_v24 = vld [vmem:[#allocation6 + $0xac] sm:$0xf0] }
  0x1c   :  { %v1915_v25 = vor.u32 %v2141_v20, %v1912_v22  ;;  %v2136_v26 = vld [vmem:[#allocation6 + $0xa4] sm:$0xf]  ;;  %v1888_v27 = vld [vmem:[#allocation6 + $0xb0] sm:$0xf0]  ;;  %v1894_v28 = vld [vmem:[#allocation6 + $0xa8] sm:$0xf]  ;;  %v1887_v29 = vor.u32 %v2138_v24, %v1886_v23 }
  0x1d   :  { %345 = vmatpush.bf16.msra.mxu0 %v1903_v16  ;;  %v2139_v30 = vld [vmem:[#allocation6 + $0xb4] sm:$0xf0]  ;;  %v2137_v31 = vld [vmem:[#allocation6 + $0xac] sm:$0xf]  ;;  %v1896_v32 = vld [vmem:[#allocation6 + $0xb8] sm:$0xf0]  ;;  %v1891_v33 = vor.u32 %v2136_v26, %v1888_v27 }
  0x1e   :  { %358 = vmatpush.bf16.msra.mxu1 %v1907_v17  ;;  %371 = vmatpush.bf16.msra.mxu2 %v1911_v21  ;;  %v1895_v34 = vor.u32 %v2139_v30, %v1894_v28  ;;  %v1870_v35 = vld [vmem:[#allocation6 + $0x80] sm:$0xf]  ;;  %v2134_v36 = vld [vmem:[#allocation6 + $0x8c] sm:$0xf0]  ;;  %v2132_v37 = vld [vmem:[#allocation6 + $0x84] sm:$0xf]  ;;  %v1899_v38 = vor.u32 %v2137_v31, %v1896_v32 }
  0x1f   :  { %384 = vmatpush.bf16.msra.mxu3 %v1915_v25  ;;  %v1872_v39 = vld [vmem:[#allocation6 + $0x90] sm:$0xf0]  ;;  %v1878_v40 = vld [vmem:[#allocation6 + $0x88] sm:$0xf]  ;;  %v2135_v41 = vld [vmem:[#allocation6 + $0x94] sm:$0xf0]  ;;  %v1871_v44 = vor.u32 %v2134_v36, %v1870_v35 }
  0x20   :  { %v2133_v42 = vld [vmem:[#allocation6 + $0x8c] sm:$0xf]  ;;  %v1880_v43 = vld [vmem:[#allocation6 + $0x98] sm:$0xf0]  ;;  %v1875_v45 = vor.u32 %v2132_v37, %v1872_v39  ;;  %v1879_v46 = vor.u32 %v2135_v41, %v1878_v40  ;;  %v1854_v47 = vld [vmem:[#allocation6 + $0x60] sm:$0xf] }
  0x21   :  { %346 = vmatpush.bf16.msra.mxu0 %v1887_v29  ;;  %v2130_v48 = vld [vmem:[#allocation6 + $0x6c] sm:$0xf0]  ;;  %v2128_v49 = vld [vmem:[#allocation6 + $0x64] sm:$0xf]  ;;  %v1883_v50 = vor.u32 %v2133_v42, %v1880_v43  ;;  %v1856_v51 = vld [vmem:[#allocation6 + $0x70] sm:$0xf0]  ;;  %v93_v29 = vlaneseq }
  0x22   :  { %359 = vmatpush.bf16.msra.mxu1 %v1891_v33  ;;  %372 = vmatpush.bf16.msra.mxu2 %v1895_v34  ;;  %v1862_v52 = vld [vmem:[#allocation6 + $0x68] sm:$0xf]  ;;  %v2131_v53 = vld [vmem:[#allocation6 + $0x74] sm:$0xf0]  ;;  %v2129_v54 = vld [vmem:[#allocation6 + $0x6c] sm:$0xf]  ;;  %v1855_v56 = vor.u32 %v2130_v48, %v1854_v47  ;;  %v1859_v57 = vor.u32 %v2128_v49, %v1856_v51 }
  0x23   :  { %385 = vmatpush.bf16.msra.mxu3 %v1899_v38  ;;  %v1864_v55 = vld [vmem:[#allocation6 + $0x78] sm:$0xf0]  ;;  %v1863_v58 = vor.u32 %v2131_v53, %v1862_v52  ;;  %v1838_v59 = vld [vmem:[#allocation6 + $0x40] sm:$0xf]  ;;  %v2126_v60 = vld [vmem:[#allocation6 + $0x4c] sm:$0xf0] }
  0x24   :  { %v2124_v61 = vld [vmem:[#allocation6 + $0x44] sm:$0xf]  ;;  %v1867_v62 = vor.u32 %v2129_v54, %v1864_v55  ;;  %v1840_v63 = vld [vmem:[#allocation6 + $0x50] sm:$0xf0]  ;;  %v1846_v0 = vld [vmem:[#allocation6 + $0x48] sm:$0xf]  ;;  %v1839_v4 = vor.u32 %v2126_v60, %v1838_v59 }
  0x25   :  { %347 = vmatpush.bf16.msra.mxu0 %v1871_v44  ;;  %v2127_v1 = vld [vmem:[#allocation6 + $0x54] sm:$0xf0]  ;;  %v2125_v2 = vld [vmem:[#allocation6 + $0x4c] sm:$0xf]  ;;  %v1848_v3 = vld [vmem:[#allocation6 + $0x58] sm:$0xf0]  ;;  %v1843_v7 = vor.u32 %v2124_v61, %v1840_v63 }
  0x26   :  { %360 = vmatpush.bf16.msra.mxu1 %v1875_v45  ;;  %373 = vmatpush.bf16.msra.mxu2 %v1879_v46  ;;  %v1822_v5 = vld [vmem:[#allocation6 + $0x20] sm:$0xf]  ;;  %v2122_v6 = vld [vmem:[#allocation6 + $0x2c] sm:$0xf0]  ;;  %v1847_v8 = vor.u32 %v2127_v1, %v1846_v0  ;;  %v2120_v9 = vld [vmem:[#allocation6 + $0x24] sm:$0xf]  ;;  %v1851_v12 = vor.u32 %v2125_v2, %v1848_v3 }
  0x27   :  { %386 = vmatpush.bf16.msra.mxu3 %v1883_v50  ;;  %v1824_v10 = vld [vmem:[#allocation6 + $0x30] sm:$0xf0]  ;;  %v1830_v11 = vld [vmem:[#allocation6 + $0x28] sm:$0xf]  ;;  %v2123_v13 = vld [vmem:[#allocation6 + $0x34] sm:$0xf0]  ;;  %v1823_v20 = vor.u32 %v2122_v6, %v1822_v5 }
  0x28   :  { %v2121_v14 = vld [vmem:[#allocation6 + $0x2c] sm:$0xf]  ;;  %v1832_v15 = vld [vmem:[#allocation6 + $0x38] sm:$0xf0]  ;;  %v1806_v16 = vld [vmem:[#allocation6] sm:$0xf]  ;;  %v1827_v24 = vor.u32 %v2120_v9, %v1824_v10  ;;  %v1831_v25 = vor.u32 %v2123_v13, %v1830_v11 }
  0x29   :  { %348 = vmatpush.bf16.msra.mxu0 %v1855_v56  ;;  %v2118_v17 = vld [vmem:[#allocation6 + $0xc] sm:$0xf0]  ;;  %v2116_v18 = vld [vmem:[#allocation6 + $0x4] sm:$0xf]  ;;  %v1808_v19 = vld [vmem:[#allocation6 + $0x10] sm:$0xf0]  ;;  %v1835_v30 = vor.u32 %v2121_v14, %v1832_v15 }
  0x2a   :  { %361 = vmatpush.bf16.msra.mxu1 %v1859_v57  ;;  %374 = vmatpush.bf16.msra.mxu2 %v1863_v58  ;;  %v1814_v21 = vld [vmem:[#allocation6 + $0x8] sm:$0xf]  ;;  %v2119_v22 = vld [vmem:[#allocation6 + $0x14] sm:$0xf0]  ;;  %v2117_v23 = vld [vmem:[#allocation6 + $0xc] sm:$0xf]  ;;  %v1807_v37 = vor.u32 %v2118_v17, %v1806_v16  ;;  %v1811_v38 = vor.u32 %v2116_v18, %v1808_v19 }
  0x2b   :  { %387 = vmatpush.bf16.msra.mxu3 %v1867_v62  ;;  %v1816_v26 = vld [vmem:[#allocation6 + $0x18] sm:$0xf0]  ;;  %v2046_v27 = vld [vmem:[#allocation7 + $0xe0] sm:$0xf]  ;;  %v2178_v28 = vld [vmem:[#allocation7 + $0xec] sm:$0xf0]  ;;  %v1815_v39 = vor.u32 %v2119_v22, %v1814_v21 }
  0x2c   :  { %v2176_v31 = vld [vmem:[#allocation7 + $0xe4] sm:$0xf]  ;;  %v2048_v32 = vld [vmem:[#allocation7 + $0xf0] sm:$0xf0]  ;;  %v2054_v33 = vld [vmem:[#allocation7 + $0xe8] sm:$0xf]  ;;  %v1819_v42 = vor.u32 %v2117_v23, %v1816_v26  ;;  %v2522_v43 = vor.u32 %v2178_v28, %v2046_v27 }
  0x2d   :  { %349 = vmatpush.bf16.msra.mxu0 %v1839_v4  ;;  %v2179_v34 = vld [vmem:[#allocation7 + $0xf4] sm:$0xf0]  ;;  %v2177_v35 = vld [vmem:[#allocation7 + $0xec] sm:$0xf]  ;;  %v2056_v36 = vld [vmem:[#allocation7 + $0xf8] sm:$0xf0]  ;;  %v2530_v51 = vor.u32 %v2176_v31, %v2048_v32 }
  0x2e   :  { %362 = vmatpush.bf16.msra.mxu1 %v1843_v7  ;;  %375 = vmatpush.bf16.msra.mxu2 %v1847_v8  ;;  %v2030_v40 = vld [vmem:[#allocation7 + $0xc0] sm:$0xf]  ;;  %v2174_v41 = vld [vmem:[#allocation7 + $0xcc] sm:$0xf0]  ;;  %s2520_s1 = sld [smem:[#allocation2]]  ;;  %v2524_v50 = vand.u32 127, %v93_v29  ;;  %v2532_v52 = vor.u32 %v2179_v34, %v2054_v33  ;;  %v2536_v55 = vor.u32 %v2177_v35, %v2056_v36 }
  0x2f   :  { %388 = vmatpush.bf16.msra.mxu3 %v1851_v12  ;;  %v2172_v44 = vld [vmem:[#allocation7 + $0xc4] sm:$0xf]  ;;  %v2032_v45 = vld [vmem:[#allocation7 + $0xd0] sm:$0xf0]  ;;  %v2038_v46 = vld [vmem:[#allocation7 + $0xc8] sm:$0xf]  ;;  %v2540_v58 = vor.u32 %v2174_v41, %v2030_v40 }
  0x30   :  { %v2175_v47 = vld [vmem:[#allocation7 + $0xd4] sm:$0xf0]  ;;  %v2173_v48 = vld [vmem:[#allocation7 + $0xcc] sm:$0xf]  ;;  %v2040_v49 = vld [vmem:[#allocation7 + $0xd8] sm:$0xf0]  ;;  %v2545_v61 = vor.u32 %v2172_v44, %v2032_v45 }
  0x31   :  { %350 = vmatpush.bf16.msra.mxu0 %v1823_v20  ;;  %s2526_s4 = sld [smem:[#allocation2 + $0x1]]  ;;  %vm127_vm0 = vcmask 1040384   ;;  %vm129_vm1 = vcmask 1041408   ;;  %vm131_vm2 = vcmask 1042432   ;;  %vm133_vm3 = vcmask 1043456   ;;  %s2452_s27 = smov [#allocation10]  }
  0x32   :  { %363 = vmatpush.bf16.msra.mxu1 %v1827_v24  ;;  %376 = vmatpush.bf16.msra.mxu2 %v1831_v25  ;;  %s2528_s14 = sld [smem:[#allocation2 + $0x2]]  ;;  %vm135_vm4 = vcmask 1044480   ;;  %v2014_v53 = vld [vmem:[#allocation7 + $0xa0] sm:$0xf]  ;;  %v2170_v54 = vld [vmem:[#allocation7 + $0xac] sm:$0xf0]  ;;  %v2547_v62 = vor.u32 %v2175_v47, %v2038_v46  ;;  %v2549_v63 = vor.u32 %v2173_v48, %v2040_v49 }
  0x33   :  { %389 = vmatpush.bf16.msra.mxu3 %v1835_v30  ;;  %s2534_s15 = sld [smem:[#allocation2 + $0x3]]  ;;  %vm137_vm5 = vcmask 1045504   ;;  %v2168_v56 = vld [vmem:[#allocation7 + $0xa4] sm:$0xf]  ;;  %v2016_v57 = vld [vmem:[#allocation7 + $0xb0] sm:$0xf0]  ;;  %v2560_v4 = vor.u32 %v2170_v54, %v2014_v53 }
  0x34   :  { %s2538_s16 = sld [smem:[#allocation2 + $0x4]]  ;;  %vm139_vm6 = vcmask 1046528   ;;  %v2022_v59 = vld [vmem:[#allocation7 + $0xa8] sm:$0xf]  ;;  %v2171_v60 = vld [vmem:[#allocation7 + $0xb4] sm:$0xf0]  ;;  %v96_v0 = vstv %s2520_s1  ;;  %v2562_v5 = vor.u32 %v2168_v56, %v2016_v57 }
  0x35   :  { %351 = vmatpush.bf16.msra.mxu0 %v1807_v37  ;;  %s2542_s17 = sld [smem:[#allocation2 + $0x5]]  ;;  %v2169_v1 = vld [vmem:[#allocation7 + $0xac] sm:$0xf]  ;;  %v2024_v2 = vld [vmem:[#allocation7 + $0xb8] sm:$0xf0]  ;;  %vm97_vm7 = vcmp.eq.s32.totalorder %v2524_v50, %v96_v0  ;;  %v2451_v6 = vmov 0.0   ;;  %v2567_v9 = vor.u32 %v2171_v60, %v2022_v59 }
  0x36   :  { %364 = vmatpush.bf16.msra.mxu1 %v1811_v38  ;;  %377 = vmatpush.bf16.msra.mxu2 %v1815_v39  ;;  %s2552_s18 = sld [smem:[#allocation2 + $0x6]]  ;;  %v98_v7 = vsel %vm97_vm7, 1.0, %v2451_v6  ;;  %v2571_v12 = vor.u32 %v2169_v1, %v2024_v2  ;;  %v1998_v19 = vld [vmem:[#allocation7 + $0x80] sm:$0xf]  ;;  %v2166_v20 = vld [vmem:[#allocation7 + $0x8c] sm:$0xf0] }
  0x37   :  { %390 = vmatpush.bf16.msra.mxu3 %v1819_v42  ;;  %v100_v3 = vstv %s2526_s4  ;;  %s2558_s19 = sld [smem:[#allocation2 + $0x7]]  ;;  %v2164_v24 = vld [vmem:[#allocation7 + $0x84] sm:$0xf]  ;;  %v2000_v25 = vld [vmem:[#allocation7 + $0x90] sm:$0xf0]  ;;  %v2592_v33 = vor.u32 %v2166_v20, %v1998_v19  ;;  %s1775_s28 = sshll.u32 %s2452_s27, 4  ;;  %s1776_s28 = int_to_ptr.vmem [resolvable:$true] %s1775_s28 }
  0x38   :  { %vm101_vm8 = vcmp.eq.s32.totalorder %v2524_v50, %v100_v3  ;;  %v104_v8 = vstv %s2528_s14  ;;  %v2006_v29 = vld [vmem:[#allocation7 + $0x88] sm:$0xf]  ;;  %v2167_v30 = vld [vmem:[#allocation7 + $0x94] sm:$0xf0]  ;;  %v2165_v34 = vld [vmem:[#allocation7 + $0x8c] sm:$0xf]  ;;  %v2599_v41 = vor.u32 %v2164_v24, %v2000_v25 }
  0x39   :  { %591 = vmatpush.bf16.msrb.mxu0 %v2522_v43  ;;  %v102_v10 = vsel %vm101_vm8, 1.0, %v2451_v6  ;;  %vm105_vm9 = vcmp.eq.s32.totalorder %v2524_v50, %v104_v8  ;;  %v108_v11 = vstv %s2534_s15  ;;  %v2008_v35 = vld [vmem:[#allocation7 + $0x98] sm:$0xf0]  ;;  %v1982_v38 = vld [vmem:[#allocation7 + $0x60] sm:$0xf]  ;;  %v2601_v44 = vor.u32 %v2167_v30, %v2006_v29  ;;  %s1777_s0 = sshll.u32 %s3010_s8, 4  ;;  %s1778_s0 = int_to_ptr.hbm [resolvable:$true] %s1777_s0 }
  0x3a   :  { %604 = vmatpush.bf16.msrb.mxu1 %v2530_v51  ;;  %617 = vmatpush.bf16.msrb.mxu2 %v2532_v52  ;;  %v106_v13 = vsel %vm105_vm9, 1.0, %v2451_v6  ;;  %vm109_vm10 = vcmp.eq.s32.totalorder %v2524_v50, %v108_v11  ;;  %v112_v14 = vstv %s2538_s16  ;;  %v128_v15 = vsel %vm127_vm0, %v98_v7, %v102_v10  ;;  %v2162_v39 = vld [vmem:[#allocation7 + $0x6c] sm:$0xf0]  ;;  %v2160_v46 = vld [vmem:[#allocation7 + $0x64] sm:$0xf] }
  0x3b   :  { %630 = vmatpush.bf16.msrb.mxu3 %v2536_v55  ;;  %v110_v16 = vsel %vm109_vm10, 1.0, %v2451_v6  ;;  %vm113_vm11 = vcmp.eq.s32.totalorder %v2524_v50, %v112_v14  ;;  %v116_v17 = vstv %s2542_s17  ;;  %v130_v18 = vsel %vm129_vm1, %v128_v15, %v106_v13  ;;  %v1984_v47 = vld [vmem:[#allocation7 + $0x70] sm:$0xf0]  ;;  %v1990_v48 = vld [vmem:[#allocation7 + $0x68] sm:$0xf] }
  0x3c   :  { %v114_v21 = vsel %vm113_vm11, 1.0, %v2451_v6  ;;  %vm117_vm12 = vcmp.eq.s32.totalorder %v2524_v50, %v116_v17  ;;  %v120_v22 = vstv %s2552_s18  ;;  %v132_v23 = vsel %vm131_vm2, %v130_v18, %v110_v16  ;;  %v2161_v53 = vld [vmem:[#allocation7 + $0x6c] sm:$0xf]  ;;  %v1992_v54 = vld [vmem:[#allocation7 + $0x78] sm:$0xf0] }
  0x3d   :  { %592 = vmatpush.bf16.msrb.mxu0 %v2540_v58  ;;  %v118_v26 = vsel %vm117_vm12, 1.0, %v2451_v6  ;;  %vm121_vm13 = vcmp.eq.s32.totalorder %v2524_v50, %v120_v22  ;;  %v124_v27 = vstv %s2558_s19  ;;  %v134_v28 = vsel %vm133_vm3, %v132_v23, %v114_v21  ;;  %v1966_v56 = vld [vmem:[#allocation7 + $0x40] sm:$0xf]  ;;  %v2158_v57 = vld [vmem:[#allocation7 + $0x4c] sm:$0xf0] }
  0x3e   :  { %605 = vmatpush.bf16.msrb.mxu1 %v2545_v61  ;;  %618 = vmatpush.bf16.msrb.mxu2 %v2547_v62  ;;  %v122_v31 = vsel %vm121_vm13, 1.0, %v2451_v6  ;;  %vm125_vm14 = vcmp.eq.s32.totalorder %v2524_v50, %v124_v27  ;;  %v136_v32 = vsel %vm135_vm4, %v134_v28, %v118_v26  ;;  %v2603_v45 = vor.u32 %v2165_v34, %v2008_v35  ;;  %v2163_v50 = vld [vmem:[#allocation7 + $0x74] sm:$0xf0]  ;;  %v2156_v1 = vld [vmem:[#allocation7 + $0x44] sm:$0xf] }
  0x3f   :  { %631 = vmatpush.bf16.msrb.mxu3 %v2549_v63  ;;  %v126_v36 = vsel %vm125_vm14, 1.0, %v2451_v6  ;;  %v138_v37 = vsel %vm137_vm5, %v136_v32, %v122_v31  ;;  %v2606_v49 = vor.u32 %v2162_v39, %v1982_v38  ;;  %v2609_v59 = vor.u32 %v2160_v46, %v1984_v47  ;;  %v1968_v2 = vld [vmem:[#allocation7 + $0x50] sm:$0xf0]  ;;  %v1974_v3 = vld [vmem:[#allocation7 + $0x48] sm:$0xf] }
  0x40   :  { %v140_v40 = vsel %vm139_vm6, %v138_v37, %v126_v36  ;;  %v2613_v60 = vor.u32 %v2163_v50, %v1990_v48  ;;  %v2615_v0 = vor.u32 %v2161_v53, %v1992_v54  ;;  %v2618_v6 = vor.u32 %v2158_v57, %v1966_v56  ;;  %v2159_v7 = vld [vmem:[#allocation7 + $0x54] sm:$0xf0]  ;;  %v2157_v8 = vld [vmem:[#allocation7 + $0x4c] sm:$0xf]  ;;  %v1976_v10 = vld [vmem:[#allocation7 + $0x58] sm:$0xf0] }
  0x41   :  { %593 = vmatpush.bf16.msrb.mxu0 %v2560_v4  ;;  %v141_v42 = vpack.c.bf16 %v140_v40, %v140_v40  ;;  %v1950_v11 = vld [vmem:[#allocation7 + $0x20] sm:$0xf]  ;;  %v2154_v13 = vld [vmem:[#allocation7 + $0x2c] sm:$0xf0]  ;;  %v2621_v14 = vor.u32 %v2156_v1, %v1968_v2  ;;  %v2625_v15 = vor.u32 %v2159_v7, %v1974_v3  ;;  %v2627_v16 = vor.u32 %v2157_v8, %v1976_v10  ;;  %v2152_v17 = vld [vmem:[#allocation7 + $0x24] sm:$0xf] }
  0x42   :  { %606 = vmatpush.bf16.msrb.mxu1 %v2562_v5  ;;  %619 = vmatpush.bf16.msrb.mxu2 %v2567_v9  ;;  %v1952_v18 = vld [vmem:[#allocation7 + $0x30] sm:$0xf0]  ;;  %v1958_v19 = vld [vmem:[#allocation7 + $0x28] sm:$0xf]  ;;  %v2630_v20 = vor.u32 %v2154_v13, %v1950_v11  ;;  %v2155_v21 = vld [vmem:[#allocation7 + $0x34] sm:$0xf0] }
  0x43   :  { %632 = vmatpush.bf16.msrb.mxu3 %v2571_v12  ;;  %352 = vmatmul.bf16.vlgmr.msra.gmra.mxu0 %v141_v42  ;;  %v2153_v22 = vld [vmem:[#allocation7 + $0x2c] sm:$0xf]  ;;  %v1960_v23 = vld [vmem:[#allocation7 + $0x38] sm:$0xf0]  ;;  %v1934_v24 = vld [vmem:[#allocation7] sm:$0xf]  ;;  %v2633_v26 = vor.u32 %v2152_v17, %v1952_v18  ;;  %v2637_v27 = vor.u32 %v2155_v21, %v1958_v19 }
  0x44   :  { %365 = vmatmul.bf16.vlgmr.msra.gmra.mxu1 %v141_v42  ;;  %378 = vmatmul.bf16.vlgmr.msra.gmra.mxu2 %v141_v42  ;;  %v2150_v25 = vld [vmem:[#allocation7 + $0xc] sm:$0xf0]  ;;  %v2639_v28 = vor.u32 %v2153_v22, %v1960_v23  ;;  %v2148_v29 = vld [vmem:[#allocation7 + $0x4] sm:$0xf]  ;;  %v1936_v30 = vld [vmem:[#allocation7 + $0x10] sm:$0xf0] }
  0x45   :  { %594 = vmatpush.bf16.msrb.mxu0 %v2592_v33  ;;  %391 = vmatmul.bf16.vlgmr.msra.gmra.mxu3 %v141_v42  ;;  %v1942_v31 = vld [vmem:[#allocation7 + $0x8] sm:$0xf]  ;;  %v2642_v32 = vor.u32 %v2150_v25, %v1934_v24  ;;  %v2151_v34 = vld [vmem:[#allocation7 + $0x14] sm:$0xf0]  ;;  %v2149_v35 = vld [vmem:[#allocation7 + $0xc] sm:$0xf]  ;;  %v2648_v38 = vor.u32 %v2148_v29, %v1936_v30 }
  0x46   :  { %607 = vmatpush.bf16.msrb.mxu1 %v2599_v41  ;;  %620 = vmatpush.bf16.msrb.mxu2 %v2601_v44  ;;  %v1944_v36 = vld [vmem:[#allocation7 + $0x18] sm:$0xf0]  ;;  %v428_v37 = vld [vmem:[%s3008_s6] sm:$0x1]  ;;  %v2652_v39 = vor.u32 %v2151_v34, %v1942_v31 }
  0x47   :  { %633 = vmatpush.bf16.msrb.mxu3 %v2603_v45  ;;  %v2654_v40 = vor.u32 %v2149_v35, %v1944_v36  ;;  %v430_v42 = vpack.c.bf16 %v428_v37, %v428_v37  ;;  %v174_v56 = vld [vmem:[%s3005_s3] sm:$0xf] }
  0x48   :  { %v176_v57 = vperm.slane %v174_v56, 0  ;;  %v177_v1 = vperm.slane %v174_v56, 1  ;;  %v178_v18 = vperm.slane %v174_v56, 2  ;;  %v179_v36 = vperm.slane %v174_v56, 3 }
  0x49   :  { %595 = vmatpush.bf16.msrb.mxu0 %v2606_v49 }
  0x4a   :  { %608 = vmatpush.bf16.msrb.mxu1 %v2609_v59  ;;  %621 = vmatpush.bf16.msrb.mxu2 %v2613_v60 }
  0x4b   :  { %634 = vmatpush.bf16.msrb.mxu3 %v2615_v0 }
  0x4d   :  { %596 = vmatpush.bf16.msrb.mxu0 %v2618_v6 }
  0x4e   :  { %609 = vmatpush.bf16.msrb.mxu1 %v2621_v14  ;;  %622 = vmatpush.bf16.msrb.mxu2 %v2625_v15 }
  0x4f   :  { %635 = vmatpush.bf16.msrb.mxu3 %v2627_v16 }
  0x51   :  { %597 = vmatpush.bf16.msrb.mxu0 %v2630_v20 }
  0x52   :  { %610 = vmatpush.bf16.msrb.mxu1 %v2633_v26  ;;  %623 = vmatpush.bf16.msrb.mxu2 %v2637_v27 }
  0x53   :  { %636 = vmatpush.bf16.msrb.mxu3 %v2639_v28 }
  0x55   :  { %598 = vmatpush.bf16.msrb.mxu0 %v2642_v32 }
  0x56   :  { %611 = vmatpush.bf16.msrb.mxu1 %v2648_v38  ;;  %624 = vmatpush.bf16.msrb.mxu2 %v2652_v39 }
  0x57   :  { %637 = vmatpush.bf16.msrb.mxu3 %v2654_v40 }
  0x58   :  { %599 = vmatmul.bf16.vlgmr.msrb.gmra.mxu0 %v430_v42 }
  0x59   :  { %711 = vmatpush.bf16.msra.mxu0 %v2522_v43  ;;  %612 = vmatmul.bf16.vlgmr.msrb.gmra.mxu1 %v430_v42 }
  0x5a   :  { %724 = vmatpush.bf16.msra.mxu1 %v2530_v51  ;;  %737 = vmatpush.bf16.msra.mxu2 %v2532_v52 }
  0x5b   :  { %625 = vmatmul.bf16.vlgmr.msrb.gmra.mxu2 %v430_v42  ;;  %638 = vmatmul.bf16.vlgmr.msrb.gmra.mxu3 %v430_v42 }
  0x5c   :  { %750 = vmatpush.bf16.msra.mxu3 %v2536_v55 }
  0x5d   :  { %712 = vmatpush.bf16.msra.mxu0 %v2540_v58 }
  0x5e   :  { %725 = vmatpush.bf16.msra.mxu1 %v2545_v61  ;;  %738 = vmatpush.bf16.msra.mxu2 %v2547_v62 }
  0x60   :  { %751 = vmatpush.bf16.msra.mxu3 %v2549_v63 }
  0x61   :  { %713 = vmatpush.bf16.msra.mxu0 %v2560_v4 }
  0x62   :  { %726 = vmatpush.bf16.msra.mxu1 %v2562_v5  ;;  %739 = vmatpush.bf16.msra.mxu2 %v2567_v9 }
  0x64   :  { %752 = vmatpush.bf16.msra.mxu3 %v2571_v12 }
  0x65   :  { %714 = vmatpush.bf16.msra.mxu0 %v2592_v33 }
  0x66   :  { %727 = vmatpush.bf16.msra.mxu1 %v2599_v41  ;;  %740 = vmatpush.bf16.msra.mxu2 %v2601_v44 }
  0x68   :  { %753 = vmatpush.bf16.msra.mxu3 %v2603_v45 }
  0x69   :  { %715 = vmatpush.bf16.msra.mxu0 %v2606_v49 }
  0x6a   :  { %728 = vmatpush.bf16.msra.mxu1 %v2609_v59  ;;  %741 = vmatpush.bf16.msra.mxu2 %v2613_v60 }
  0x6c   :  { %754 = vmatpush.bf16.msra.mxu3 %v2615_v0 }
  0x6d   :  { %716 = vmatpush.bf16.msra.mxu0 %v2618_v6 }
  0x6e   :  { %729 = vmatpush.bf16.msra.mxu1 %v2621_v14  ;;  %742 = vmatpush.bf16.msra.mxu2 %v2625_v15 }
  0x70   :  { %755 = vmatpush.bf16.msra.mxu3 %v2627_v16 }
  0x71   :  { %717 = vmatpush.bf16.msra.mxu0 %v2630_v20 }
  0x72   :  { %730 = vmatpush.bf16.msra.mxu1 %v2633_v26  ;;  %743 = vmatpush.bf16.msra.mxu2 %v2637_v27 }
  0x74   :  { %756 = vmatpush.bf16.msra.mxu3 %v2639_v28 }
  0x75   :  { %718 = vmatpush.bf16.msra.mxu0 %v2642_v32 }
  0x76   :  { %731 = vmatpush.bf16.msra.mxu1 %v2648_v38  ;;  %744 = vmatpush.bf16.msra.mxu2 %v2652_v39 }
  0x78   :  { %757 = vmatpush.bf16.msra.mxu3 %v2654_v40 }
  0x79   :  { %850 = vmatpush.bf16.msrb.mxu0 %v2522_v43 }
  0x7a   :  { %863 = vmatpush.bf16.msrb.mxu1 %v2530_v51  ;;  %876 = vmatpush.bf16.msrb.mxu2 %v2532_v52 }
  0x7c   :  { %889 = vmatpush.bf16.msrb.mxu3 %v2536_v55 }
  0x7d   :  { %851 = vmatpush.bf16.msrb.mxu0 %v2540_v58 }
  0x7e   :  { %864 = vmatpush.bf16.msrb.mxu1 %v2545_v61  ;;  %877 = vmatpush.bf16.msrb.mxu2 %v2547_v62 }
  0x80   :  { %890 = vmatpush.bf16.msrb.mxu3 %v2549_v63 }
  0x81   :  { %852 = vmatpush.bf16.msrb.mxu0 %v2560_v4 }
  0x82   :  { %865 = vmatpush.bf16.msrb.mxu1 %v2562_v5  ;;  %878 = vmatpush.bf16.msrb.mxu2 %v2567_v9 }
  0x84   :  { %891 = vmatpush.bf16.msrb.mxu3 %v2571_v12 }
  0x85   :  { %853 = vmatpush.bf16.msrb.mxu0 %v2592_v33 }
  0x86   :  { %866 = vmatpush.bf16.msrb.mxu1 %v2599_v41  ;;  %879 = vmatpush.bf16.msrb.mxu2 %v2601_v44 }
  0x88   :  { %892 = vmatpush.bf16.msrb.mxu3 %v2603_v45 }
  0x89   :  { %854 = vmatpush.bf16.msrb.mxu0 %v2606_v49 }
  0x8a   :  { %867 = vmatpush.bf16.msrb.mxu1 %v2609_v59  ;;  %880 = vmatpush.bf16.msrb.mxu2 %v2613_v60 }
  0x8c   :  { %893 = vmatpush.bf16.msrb.mxu3 %v2615_v0 }
  0x8d   :  { %855 = vmatpush.bf16.msrb.mxu0 %v2618_v6 }
  0x8e   :  { %868 = vmatpush.bf16.msrb.mxu1 %v2621_v14  ;;  %881 = vmatpush.bf16.msrb.mxu2 %v2625_v15 }
  0x90   :  { %894 = vmatpush.bf16.msrb.mxu3 %v2627_v16 }
  0x91   :  { %856 = vmatpush.bf16.msrb.mxu0 %v2630_v20 }
  0x92   :  { %869 = vmatpush.bf16.msrb.mxu1 %v2633_v26  ;;  %882 = vmatpush.bf16.msrb.mxu2 %v2637_v27 }
  0x94   :  { %895 = vmatpush.bf16.msrb.mxu3 %v2639_v28 }
  0x95   :  { %857 = vmatpush.bf16.msrb.mxu0 %v2642_v32 }
  0x96   :  { %870 = vmatpush.bf16.msrb.mxu1 %v2648_v38  ;;  %883 = vmatpush.bf16.msrb.mxu2 %v2652_v39 }
  0x98   :  { %896 = vmatpush.bf16.msrb.mxu3 %v2654_v40 }
  0xc0   :  { %v353_v46 = vpop.f32.mrf.mxu0 }
  0xc1   :  { %v366_v47 = vpop.f32.mrf.mxu1  ;;  %v2727_v7 = vadd.f32 %v353_v46, %v176_v57 }
  0xc2   :  { %v2729_v8 = vadd.f32 %v366_v47, %v177_v1 }
  0xc7   :  { %v379_v48 = vpop.f32.mrf.mxu2 }
  0xc8   :  { %v355_v50 = vpop.f32.mrf.mxu0  ;;  %v392_v54 = vpop.f32.mrf.mxu3  ;;  %v2733_v22 = vadd.f32 %v379_v48, %v178_v18 }
  0xc9   :  { %v368_v53 = vpop.f32.mrf.mxu1  ;;  %v2736_v46 = vadd.f32 %v392_v54, %v179_v36 }
  0xcb   :  { %3015 = vst [vmem:[#allocation15_spill] sm:$0xff] %v2736_v46 }
  0xcf   :  { %v381_v2 = vpop.f32.mrf.mxu2 }
  0xd0   :  { %v394_v3 = vpop.f32.mrf.mxu3 }
  0xd5   :  { %v600_v10 = vpop.f32.mrf.mxu0 }
  0xd6   :  { %v643_v11 = vadd.f32 %v600_v10, %v2727_v7  ;;  %v613_v13 = vpop.f32.mrf.mxu1 }
  0xd7   :  { %v644_v17 = vadd.f32 %v613_v13, %v2729_v8 }
  0xd8   :  { %v2060_v19 = vmul.f32 -1.442695, %v643_v11 }
  0xd9   :  { %v2061_v21 = vmul.f32 -1.442695, %v644_v17 }
  0xda   :  { %2199 = vpow2.f32 %v2060_v19 }
  0xdb   :  { %2201 = vpow2.f32 %v2061_v21 }
  0xdd   :  { %v602_v29 = vpop.f32.mrf.mxu0 }
  0xde   :  { %v626_v23 = vpop.f32.mrf.mxu2  ;;  %v639_v24 = vpop.f32.mrf.mxu3 }
  0xdf   :  { %v645_v25 = vadd.f32 %v626_v23, %v2733_v22  ;;  %v615_v30 = vpop.f32.mrf.mxu1  ;;  %v646_v1 = vadd.f32 %v639_v24, %v2736_v46 }
  0xe0   :  { %v2200_v31 = vpop.eup %2199 }
  0xe1   :  { %v2062_v34 = vmul.f32 -1.442695, %v645_v25  ;;  %v2202_v35 = vpop.eup %2201  ;;  %v656_v37 = vadd.f32 1.0, %v2200_v31 }
  0xe2   :  { %v657_v42 = vadd.f32 1.0, %v2202_v35 }
  0xe3   :  { %2203 = vpow2.f32 %v2062_v34  ;;  %v670_v13 = vand.u32 2147483648, %v656_v37  ;;  %v668_v54 = vand.u32 2147483647, %v656_v37  ;;  %vm664_vm8 = vweird.f32 %v656_v37  ;;  %v429_v34 = vld [vmem:[%s3009_s7] sm:$0x1] }
  0xe4   :  { %2205 = vrcp.f32 %v656_v37  ;;  %v685_v17 = vand.u32 2147483648, %v657_v42  ;;  %v683_v21 = vand.u32 2147483647, %v657_v42  ;;  %vm679_vm9 = vweird.f32 %v657_v42 }
  0xe5   :  { %2207 = vrcp.f32 %v657_v42  ;;  %v671_v24 = vor.u32 1.1754944e-38, %v670_v13  ;;  %vm669_vm12 = vcmp.eq.f32.partialorder %v668_v54, 8.507059e+37 }
  0xe6   :  { %v628_v47 = vpop.f32.mrf.mxu2  ;;  %v641_v48 = vpop.f32.mrf.mxu3  ;;  %v686_v30 = vor.u32 1.1754944e-38, %v685_v17  ;;  %vm684_vm13 = vcmp.eq.f32.partialorder %v683_v21, 8.507059e+37 }
  0xe9   :  { %v2204_v50 = vpop.eup %2203 }
  0xea   :  { %v2206_v53 = vpop.eup %2205  ;;  %v658_v57 = vadd.f32 1.0, %v2204_v50 }
  0xeb   :  { %v2208_v2 = vpop.eup %2207  ;;  %v660_v3 = vmul.f32 %v2206_v53, %v656_v37  ;;  %vm665_vm15 = vweird.f32 %v2206_v53 }
  0xec   :  { %v675_v10 = vmul.f32 %v2208_v2, %v657_v42  ;;  %2209 = vrcp.f32 %v658_v57  ;;  %vm680_vm7 = vweird.f32 %v2208_v2  ;;  %vm666_vm10 = vmor %vm664_vm8, %vm665_vm15  ;;  %vm694_vm15 = vweird.f32 %v658_v57 }
  0xed   :  { %v661_v11 = vsub.f32 1.0, %v660_v3  ;;  %2211 = vtanh.f32 %v646_v1  ;;  %vm681_vm11 = vmor %vm679_vm9, %vm680_vm7  ;;  %v698_v13 = vand.u32 2147483647, %v658_v57 }
  0xee   :  { %v676_v56 = vsub.f32 1.0, %v675_v10 }
  0xef   :  { %v662_v18 = vmul.f32 %v2206_v53, %v661_v11  ;;  %vm699_vm8 = vcmp.eq.f32.partialorder %v698_v13, 8.507059e+37 }
  0xf0   :  { %v677_v19 = vmul.f32 %v2208_v2, %v676_v56  ;;  %v700_v56 = vand.u32 2147483648, %v658_v57 }
  0xf1   :  { %v663_v23 = vadd.f32 %v2206_v53, %v662_v18 }
  0xf2   :  { %v2210_v25 = vpop.eup %2209  ;;  %v678_v29 = vadd.f32 %v2208_v2, %v677_v19  ;;  %v701_v17 = vor.u32 1.1754944e-38, %v700_v56 }
  0xf3   :  { %v690_v31 = vmul.f32 %v2210_v25, %v658_v57  ;;  %v667_v35 = vsel %vm666_vm10, %v2206_v53, %v663_v23  ;;  %v2212_v36 = vpop.eup %2211  ;;  %vm695_vm14 = vweird.f32 %v2210_v25 }
  0xf4   :  { %v672_v47 = vsel %vm669_vm12, %v671_v24, %v667_v35  ;;  %v682_v48 = vsel %vm681_vm11, %v2208_v2, %v678_v29  ;;  %vm696_vm7 = vmor %vm694_vm15, %vm695_vm14 }
  0xf5   :  { %v691_v50 = vsub.f32 1.0, %v690_v31  ;;  %v687_v37 = vsel %vm684_vm13, %v686_v30, %v682_v48  ;;  %v706_v1 = vmul.f32 %v2212_v36, %v672_v47 }
  0xf6   :  { %v705_v42 = vmul.f32 %v687_v37, %v429_v34 }
  0xf7   :  { %v692_v3 = vmul.f32 %v2210_v25, %v691_v50 }
  0xf8   :  { %v2742_v10 = vadd.f32 %v706_v1, %v705_v42 }
  0xf9   :  { %v693_v11 = vadd.f32 %v2210_v25, %v692_v3 }
  0xfa   :  { %2213 = vtanh.f32 %v2742_v10 }
  0xfb   :  { %v697_v53 = vsel %vm696_vm7, %v2210_v25, %v693_v11 }
  0xfc   :  { %v702_v18 = vsel %vm699_vm8, %v701_v17, %v697_v53 }
 0x100   :  { %v2214_v2 = vpop.eup %2213 }
 0x101   :  { %v2745_v54 = vmul.f32 %v2214_v2, %v702_v18 }
 0x103   :  { %v710_v19 = vpack.c.bf16 %v2745_v54, %v2745_v54 }
 0x105   :  { %719 = vmatmul.bf16.vlgmr.msra.gmra.mxu0 %v710_v19  ;;  %732 = vmatmul.bf16.vlgmr.msra.gmra.mxu1 %v710_v19 }
 0x106   :  { %745 = vmatmul.bf16.vlgmr.msra.gmra.mxu2 %v710_v19  ;;  %758 = vmatmul.bf16.vlgmr.msra.gmra.mxu3 %v710_v19 }
 0x107   :  { %988 = vmatpush.bf16.msra.mxu0 %v2522_v43  ;;  %1001 = vmatpush.bf16.msra.mxu1 %v2530_v51 }
 0x108   :  { %1014 = vmatpush.bf16.msra.mxu2 %v2532_v52  ;;  %1027 = vmatpush.bf16.msra.mxu3 %v2536_v55 }
 0x10b   :  { %989 = vmatpush.bf16.msra.mxu0 %v2540_v58  ;;  %1002 = vmatpush.bf16.msra.mxu1 %v2545_v61 }
 0x10c   :  { %1015 = vmatpush.bf16.msra.mxu2 %v2547_v62  ;;  %1028 = vmatpush.bf16.msra.mxu3 %v2549_v63 }
 0x10f   :  { %990 = vmatpush.bf16.msra.mxu0 %v2560_v4  ;;  %1003 = vmatpush.bf16.msra.mxu1 %v2562_v5 }
 0x110   :  { %1016 = vmatpush.bf16.msra.mxu2 %v2567_v9  ;;  %1029 = vmatpush.bf16.msra.mxu3 %v2571_v12 }
 0x113   :  { %991 = vmatpush.bf16.msra.mxu0 %v2592_v33  ;;  %1004 = vmatpush.bf16.msra.mxu1 %v2599_v41 }
 0x114   :  { %1017 = vmatpush.bf16.msra.mxu2 %v2601_v44  ;;  %1030 = vmatpush.bf16.msra.mxu3 %v2603_v45 }
 0x117   :  { %992 = vmatpush.bf16.msra.mxu0 %v2606_v49  ;;  %1005 = vmatpush.bf16.msra.mxu1 %v2609_v59 }
 0x118   :  { %1018 = vmatpush.bf16.msra.mxu2 %v2613_v60  ;;  %1031 = vmatpush.bf16.msra.mxu3 %v2615_v0 }
 0x11b   :  { %993 = vmatpush.bf16.msra.mxu0 %v2618_v6  ;;  %1006 = vmatpush.bf16.msra.mxu1 %v2621_v14 }
 0x11c   :  { %1019 = vmatpush.bf16.msra.mxu2 %v2625_v15  ;;  %1032 = vmatpush.bf16.msra.mxu3 %v2627_v16 }
 0x11f   :  { %994 = vmatpush.bf16.msra.mxu0 %v2630_v20  ;;  %1007 = vmatpush.bf16.msra.mxu1 %v2633_v26 }
 0x120   :  { %1020 = vmatpush.bf16.msra.mxu2 %v2637_v27  ;;  %1033 = vmatpush.bf16.msra.mxu3 %v2639_v28 }
 0x123   :  { %995 = vmatpush.bf16.msra.mxu0 %v2642_v32  ;;  %1008 = vmatpush.bf16.msra.mxu1 %v2648_v38 }
 0x124   :  { %1021 = vmatpush.bf16.msra.mxu2 %v2652_v39  ;;  %1034 = vmatpush.bf16.msra.mxu3 %v2654_v40 }
 0x182   :  { %v720_v57 = vpop.f32.mrf.mxu0  ;;  %v733_v21 = vpop.f32.mrf.mxu1 }
 0x183   :  { %v767_v23 = vrot.slane %v720_v57, 7  ;;  %v768_v25 = vrot.slane %v733_v21, 7 }
 0x185   :  { %v775_v24 = vadd.f32 %v767_v23, %v2727_v7  ;;  %v776_v29 = vadd.f32 %v768_v25, %v2729_v8 }
 0x187   :  { %v2063_v30 = vmul.f32 -1.442695, %v775_v24  ;;  %v2064_v31 = vmul.f32 -1.442695, %v776_v29 }
 0x189   :  { %2215 = vpow2.f32 %v2063_v30  ;;  %v746_v34 = vpop.f32.mrf.mxu2  ;;  %v759_v35 = vpop.f32.mrf.mxu3 }
 0x18a   :  { %2217 = vpow2.f32 %v2064_v31  ;;  %v769_v36 = vrot.slane %v746_v34, 7  ;;  %v722_v47 = vpop.f32.mrf.mxu0  ;;  %v735_v48 = vpop.f32.mrf.mxu1  ;;  %v770_v53 = vrot.slane %v759_v35, 7 }
 0x18c   :  { %v777_v50 = vadd.f32 %v769_v36, %v2733_v22  ;;  %v778_v19 = vadd.f32 %v770_v53, %v2736_v46 }
 0x18e   :  { %v2065_v37 = vmul.f32 -1.442695, %v777_v50 }
 0x18f   :  { %v2216_v1 = vpop.eup %2215 }
 0x190   :  { %v2218_v42 = vpop.eup %2217  ;;  %v788_v3 = vadd.f32 1.0, %v2216_v1  ;;  %2219 = vpow2.f32 %v2065_v37 }
 0x191   :  { %v789_v11 = vadd.f32 1.0, %v2218_v42  ;;  %v748_v56 = vpop.f32.mrf.mxu2  ;;  %v761_v13 = vpop.f32.mrf.mxu3  ;;  %v838_v42 = vrot.slane %v2742_v10, 7 }
 0x192   :  { %2221 = vrcp.f32 %v788_v3  ;;  %v802_v29 = vand.u32 2147483648, %v788_v3  ;;  %v800_v34 = vand.u32 2147483647, %v788_v3  ;;  %vm796_vm11 = vweird.f32 %v788_v3 }
 0x193   :  { %2223 = vrcp.f32 %v789_v11  ;;  %v817_v30 = vand.u32 2147483648, %v789_v11  ;;  %v815_v35 = vand.u32 2147483647, %v789_v11  ;;  %vm811_vm12 = vweird.f32 %v789_v11 }
 0x194   :  { %v803_v37 = vor.u32 1.1754944e-38, %v802_v29  ;;  %vm801_vm15 = vcmp.eq.f32.partialorder %v800_v34, 8.507059e+37 }
 0x195   :  { %v818_v56 = vor.u32 1.1754944e-38, %v817_v30  ;;  %vm816_vm7 = vcmp.eq.f32.partialorder %v815_v35, 8.507059e+37 }
 0x196   :  { %v2220_v17 = vpop.eup %2219 }
 0x197   :  { %v790_v2 = vadd.f32 1.0, %v2220_v17 }
 0x198   :  { %v2222_v18 = vpop.eup %2221 }
 0x199   :  { %v2224_v57 = vpop.eup %2223  ;;  %v792_v21 = vmul.f32 %v2222_v18, %v788_v3  ;;  %2225 = vrcp.f32 %v790_v2  ;;  %vm797_vm9 = vweird.f32 %v2222_v18  ;;  %v832_v10 = vand.u32 2147483648, %v790_v2 }
 0x19a   :  { %v807_v23 = vmul.f32 %v2224_v57, %v789_v11  ;;  %2227 = vtanh.f32 %v778_v19  ;;  %vm812_vm10 = vweird.f32 %v2224_v57  ;;  %vm798_vm13 = vmor %vm796_vm11, %vm797_vm9  ;;  %vm826_vm9 = vweird.f32 %v790_v2 }
 0x19b   :  { %v793_v25 = vsub.f32 1.0, %v792_v21  ;;  %vm813_vm14 = vmor %vm811_vm12, %vm812_vm10  ;;  %v830_v29 = vand.u32 2147483647, %v790_v2  ;;  %v833_v30 = vor.u32 1.1754944e-38, %v832_v10 }
 0x19c   :  { %v808_v24 = vsub.f32 1.0, %v807_v23 }
 0x19d   :  { %v794_v31 = vmul.f32 %v2222_v18, %v793_v25  ;;  %vm831_vm11 = vcmp.eq.f32.partialorder %v830_v29, 8.507059e+37 }
 0x19e   :  { %v809_v36 = vmul.f32 %v2224_v57, %v808_v24 }
 0x19f   :  { %v2226_v47 = vpop.eup %2225  ;;  %v795_v48 = vadd.f32 %v2222_v18, %v794_v31 }
 0x1a0   :  { %v822_v50 = vmul.f32 %v2226_v47, %v790_v2  ;;  %v810_v1 = vadd.f32 %v2224_v57, %v809_v36  ;;  %v2228_v53 = vpop.eup %2227  ;;  %vm827_vm8 = vweird.f32 %v2226_v47 }
 0x1a1   :  { %v799_v13 = vsel %vm798_vm13, %v2222_v18, %v795_v48  ;;  %vm828_vm10 = vmor %vm826_vm9, %vm827_vm8 }
 0x1a2   :  { %v823_v17 = vsub.f32 1.0, %v822_v50  ;;  %v804_v19 = vsel %vm801_vm15, %v803_v37, %v799_v13  ;;  %v814_v21 = vsel %vm813_vm14, %v2224_v57, %v810_v1 }
 0x1a3   :  { %v819_v23 = vsel %vm816_vm7, %v818_v56, %v814_v21  ;;  %v841_v25 = vmul.f32 %v2228_v53, %v804_v19 }
 0x1a4   :  { %v840_v24 = vmul.f32 %v838_v42, %v819_v23  ;;  %v824_v3 = vmul.f32 %v2226_v47, %v823_v17 }
 0x1a6   :  { %v2786_v11 = vadd.f32 %v841_v25, %v840_v24  ;;  %v825_v31 = vadd.f32 %v2226_v47, %v824_v3 }
 0x1a8   :  { %2229 = vtanh.f32 %v2786_v11  ;;  %v829_v18 = vsel %vm828_vm10, %v2226_v47, %v825_v31 }
 0x1a9   :  { %v834_v57 = vsel %vm831_vm11, %v833_v30, %v829_v18 }
 0x1ae   :  { %v2230_v34 = vpop.eup %2229 }
 0x1af   :  { %v2789_v36 = vmul.f32 %v2230_v34, %v834_v57 }
 0x1b1   :  { %v845_v35 = vpack.c.bf16 %v2789_v36, %v2789_v36 }
 0x1b3   :  { %v847_v48 = vshrl.u32 %v845_v35, 16 }
 0x1b5   :  { %858 = vmatmul.bf16.vlgmr.msrb.gmra.mxu0 %v847_v48  ;;  %871 = vmatmul.bf16.vlgmr.msrb.gmra.mxu1 %v847_v48 }
 0x1b6   :  { %884 = vmatmul.bf16.vlgmr.msrb.gmra.mxu2 %v847_v48  ;;  %897 = vmatmul.bf16.vlgmr.msrb.gmra.mxu3 %v847_v48 }
 0x1b7   :  { %1128 = vmatpush.bf16.msrb.mxu0 %v2522_v43  ;;  %1141 = vmatpush.bf16.msrb.mxu1 %v2530_v51 }
 0x1b8   :  { %1154 = vmatpush.bf16.msrb.mxu2 %v2532_v52  ;;  %1167 = vmatpush.bf16.msrb.mxu3 %v2536_v55 }
 0x1bb   :  { %1129 = vmatpush.bf16.msrb.mxu0 %v2540_v58  ;;  %1142 = vmatpush.bf16.msrb.mxu1 %v2545_v61 }
 0x1bc   :  { %1155 = vmatpush.bf16.msrb.mxu2 %v2547_v62  ;;  %1168 = vmatpush.bf16.msrb.mxu3 %v2549_v63 }
 0x1bf   :  { %1130 = vmatpush.bf16.msrb.mxu0 %v2560_v4  ;;  %1143 = vmatpush.bf16.msrb.mxu1 %v2562_v5 }
 0x1c0   :  { %1156 = vmatpush.bf16.msrb.mxu2 %v2567_v9  ;;  %1169 = vmatpush.bf16.msrb.mxu3 %v2571_v12 }
 0x1c3   :  { %1131 = vmatpush.bf16.msrb.mxu0 %v2592_v33  ;;  %1144 = vmatpush.bf16.msrb.mxu1 %v2599_v41 }
 0x1c4   :  { %1157 = vmatpush.bf16.msrb.mxu2 %v2601_v44  ;;  %1170 = vmatpush.bf16.msrb.mxu3 %v2603_v45 }
 0x1c7   :  { %1132 = vmatpush.bf16.msrb.mxu0 %v2606_v49  ;;  %1145 = vmatpush.bf16.msrb.mxu1 %v2609_v59 }
 0x1c8   :  { %1158 = vmatpush.bf16.msrb.mxu2 %v2613_v60  ;;  %1171 = vmatpush.bf16.msrb.mxu3 %v2615_v0 }
 0x1cb   :  { %1133 = vmatpush.bf16.msrb.mxu0 %v2618_v6  ;;  %1146 = vmatpush.bf16.msrb.mxu1 %v2621_v14 }
 0x1cc   :  { %1159 = vmatpush.bf16.msrb.mxu2 %v2625_v15  ;;  %1172 = vmatpush.bf16.msrb.mxu3 %v2627_v16 }
 0x1cf   :  { %1134 = vmatpush.bf16.msrb.mxu0 %v2630_v20  ;;  %1147 = vmatpush.bf16.msrb.mxu1 %v2633_v26 }
 0x1d0   :  { %1160 = vmatpush.bf16.msrb.mxu2 %v2637_v27  ;;  %1173 = vmatpush.bf16.msrb.mxu3 %v2639_v28 }
 0x1d3   :  { %1135 = vmatpush.bf16.msrb.mxu0 %v2642_v32  ;;  %1148 = vmatpush.bf16.msrb.mxu1 %v2648_v38 }
 0x1d4   :  { %1161 = vmatpush.bf16.msrb.mxu2 %v2652_v39  ;;  %1174 = vmatpush.bf16.msrb.mxu3 %v2654_v40 }
 0x232   :  { %v859_v2 = vpop.f32.mrf.mxu0  ;;  %v872_v47 = vpop.f32.mrf.mxu1 }
 0x233   :  { %v906_v50 = vrot.slane %v859_v2, 6  ;;  %v907_v37 = vrot.slane %v872_v47, 6 }
 0x235   :  { %v914_v1 = vadd.f32 %v906_v50, %v2727_v7  ;;  %v915_v42 = vadd.f32 %v907_v37, %v2729_v8 }
 0x237   :  { %v2066_v56 = vmul.f32 -1.442695, %v914_v1  ;;  %v2067_v13 = vmul.f32 -1.442695, %v915_v42 }
 0x239   :  { %2231 = vpow2.f32 %v2066_v56  ;;  %v885_v53 = vpop.f32.mrf.mxu2  ;;  %v898_v17 = vpop.f32.mrf.mxu3 }
 0x23a   :  { %2233 = vpow2.f32 %v2067_v13  ;;  %v908_v19 = vrot.slane %v885_v53, 6  ;;  %v861_v21 = vpop.f32.mrf.mxu0  ;;  %v874_v23 = vpop.f32.mrf.mxu1  ;;  %v909_v34 = vrot.slane %v898_v17, 6 }
 0x23c   :  { %v916_v25 = vadd.f32 %v908_v19, %v2733_v22  ;;  %v917_v2 = vadd.f32 %v909_v34, %v2736_v46 }
 0x23e   :  { %v2068_v24 = vmul.f32 -1.442695, %v916_v25 }
 0x23f   :  { %v2232_v3 = vpop.eup %2231 }
 0x240   :  { %v2234_v31 = vpop.eup %2233  ;;  %v927_v10 = vadd.f32 1.0, %v2232_v3  ;;  %2235 = vpow2.f32 %v2068_v24 }
 0x241   :  { %v928_v29 = vadd.f32 1.0, %v2234_v31  ;;  %v887_v18 = vpop.f32.mrf.mxu2  ;;  %v900_v30 = vpop.f32.mrf.mxu3 }
 0x242   :  { %2237 = vrcp.f32 %v927_v10  ;;  %v941_v56 = vand.u32 2147483648, %v927_v10  ;;  %v939_v19 = vand.u32 2147483647, %v927_v10  ;;  %vm935_vm14 = vweird.f32 %v927_v10 }
 0x243   :  { %2239 = vrcp.f32 %v928_v29  ;;  %v956_v13 = vand.u32 2147483648, %v928_v29  ;;  %v954_v17 = vand.u32 2147483647, %v928_v29  ;;  %vm950_vm15 = vweird.f32 %v928_v29 }
 0x244   :  { %v942_v3 = vor.u32 1.1754944e-38, %v941_v56  ;;  %v977_v18 = vrot.slane %v2786_v11, 7  ;;  %vm940_vm9 = vcmp.eq.f32.partialorder %v939_v19, 8.507059e+37 }
 0x245   :  { %v957_v30 = vor.u32 1.1754944e-38, %v956_v13  ;;  %vm955_vm10 = vcmp.eq.f32.partialorder %v954_v17, 8.507059e+37  ;;  %v1678_v17 = vsel %vm127_vm0, %v2745_v54, %v2789_v36 }
 0x246   :  { %v2236_v57 = vpop.eup %2235 }
 0x247   :  { %v929_v35 = vadd.f32 1.0, %v2236_v57 }
 0x248   :  { %v2238_v48 = vpop.eup %2237 }
 0x249   :  { %v2240_v47 = vpop.eup %2239  ;;  %v931_v50 = vmul.f32 %v2238_v48, %v927_v10  ;;  %2241 = vrcp.f32 %v929_v35  ;;  %vm936_vm12 = vweird.f32 %v2238_v48  ;;  %v971_v11 = vand.u32 2147483648, %v929_v35 }
 0x24a   :  { %v946_v37 = vmul.f32 %v2240_v47, %v928_v29  ;;  %2243 = vtanh.f32 %v917_v2  ;;  %vm951_vm13 = vweird.f32 %v2240_v47  ;;  %vm937_vm7 = vmor %vm935_vm14, %vm936_vm12  ;;  %vm965_vm12 = vweird.f32 %v929_v35 }
 0x24b   :  { %v932_v1 = vsub.f32 1.0, %v931_v50  ;;  %vm952_vm8 = vmor %vm950_vm15, %vm951_vm13  ;;  %v969_v56 = vand.u32 2147483647, %v929_v35  ;;  %v972_v13 = vor.u32 1.1754944e-38, %v971_v11 }
 0x24c   :  { %v947_v42 = vsub.f32 1.0, %v946_v37 }
 0x24d   :  { %v933_v53 = vmul.f32 %v2238_v48, %v932_v1  ;;  %vm970_vm14 = vcmp.eq.f32.partialorder %v969_v56, 8.507059e+37 }
 0x24e   :  { %v948_v21 = vmul.f32 %v2240_v47, %v947_v42 }
 0x24f   :  { %v2242_v23 = vpop.eup %2241  ;;  %v934_v25 = vadd.f32 %v2238_v48, %v933_v53 }
 0x250   :  { %v961_v24 = vmul.f32 %v2242_v23, %v929_v35  ;;  %v949_v31 = vadd.f32 %v2240_v47, %v948_v21  ;;  %v2244_v57 = vpop.eup %2243  ;;  %vm966_vm11 = vweird.f32 %v2242_v23 }
 0x251   :  { %v938_v34 = vsel %vm937_vm7, %v2238_v48, %v934_v25  ;;  %vm967_vm13 = vmor %vm965_vm12, %vm966_vm11 }
 0x252   :  { %v962_v2 = vsub.f32 1.0, %v961_v24  ;;  %v943_v50 = vsel %vm940_vm9, %v942_v3, %v938_v34  ;;  %v953_v37 = vsel %vm952_vm8, %v2240_v47, %v949_v31 }
 0x253   :  { %v958_v1 = vsel %vm955_vm10, %v957_v30, %v953_v37  ;;  %v980_v42 = vmul.f32 %v2244_v57, %v943_v50 }
 0x254   :  { %v979_v53 = vmul.f32 %v977_v18, %v958_v1  ;;  %v963_v10 = vmul.f32 %v2242_v23, %v962_v2 }
 0x256   :  { %v2830_v29 = vadd.f32 %v980_v42, %v979_v53  ;;  %v964_v46 = vadd.f32 %v2242_v23, %v963_v10 }
 0x258   :  { %2245 = vtanh.f32 %v2830_v29  ;;  %v968_v48 = vsel %vm967_vm13, %v2242_v23, %v964_v46 }
 0x259   :  { %v973_v47 = vsel %vm970_vm14, %v972_v13, %v968_v48 }
 0x25e   :  { %v2246_v19 = vpop.eup %2245 }
 0x25f   :  { %v983_v21 = vmul.f32 %v2246_v19, %v973_v47 }
 0x261   :  { %v984_v25 = vpack.c.bf16 %v983_v21, %v983_v21  ;;  %v2837_v24 = vsel %vm129_vm1, %v1678_v17, %v983_v21 }
 0x263   :  { %v986_v3 = vrot.slane %v984_v25, 1  ;;  %v3016_v25 = vld [vmem:[#allocation15_spill] sm:$0xff] }
 0x265   :  { %996 = vmatmul.bf16.vlgmr.msra.gmra.mxu0 %v986_v3  ;;  %1009 = vmatmul.bf16.vlgmr.msra.gmra.mxu1 %v986_v3 }
 0x266   :  { %1022 = vmatmul.bf16.vlgmr.msra.gmra.mxu2 %v986_v3  ;;  %1035 = vmatmul.bf16.vlgmr.msra.gmra.mxu3 %v986_v3 }
 0x267   :  { %1266 = vmatpush.bf16.msra.mxu0 %v2522_v43  ;;  %1279 = vmatpush.bf16.msra.mxu1 %v2530_v51 }
 0x268   :  { %1292 = vmatpush.bf16.msra.mxu2 %v2532_v52  ;;  %1305 = vmatpush.bf16.msra.mxu3 %v2536_v55 }
 0x26b   :  { %1267 = vmatpush.bf16.msra.mxu0 %v2540_v58  ;;  %1280 = vmatpush.bf16.msra.mxu1 %v2545_v61 }
 0x26c   :  { %1293 = vmatpush.bf16.msra.mxu2 %v2547_v62  ;;  %1306 = vmatpush.bf16.msra.mxu3 %v2549_v63 }
 0x26f   :  { %1268 = vmatpush.bf16.msra.mxu0 %v2560_v4  ;;  %1281 = vmatpush.bf16.msra.mxu1 %v2562_v5 }
 0x270   :  { %1294 = vmatpush.bf16.msra.mxu2 %v2567_v9  ;;  %1307 = vmatpush.bf16.msra.mxu3 %v2571_v12 }
 0x273   :  { %1269 = vmatpush.bf16.msra.mxu0 %v2592_v33  ;;  %1282 = vmatpush.bf16.msra.mxu1 %v2599_v41 }
 0x274   :  { %1295 = vmatpush.bf16.msra.mxu2 %v2601_v44  ;;  %1308 = vmatpush.bf16.msra.mxu3 %v2603_v45 }
 0x277   :  { %1270 = vmatpush.bf16.msra.mxu0 %v2606_v49  ;;  %1283 = vmatpush.bf16.msra.mxu1 %v2609_v59 }
 0x278   :  { %1296 = vmatpush.bf16.msra.mxu2 %v2613_v60  ;;  %1309 = vmatpush.bf16.msra.mxu3 %v2615_v0 }
 0x27b   :  { %1271 = vmatpush.bf16.msra.mxu0 %v2618_v6  ;;  %1284 = vmatpush.bf16.msra.mxu1 %v2621_v14 }
 0x27c   :  { %1297 = vmatpush.bf16.msra.mxu2 %v2625_v15  ;;  %1310 = vmatpush.bf16.msra.mxu3 %v2627_v16 }
 0x27f   :  { %1272 = vmatpush.bf16.msra.mxu0 %v2630_v20  ;;  %1285 = vmatpush.bf16.msra.mxu1 %v2633_v26 }
 0x280   :  { %1298 = vmatpush.bf16.msra.mxu2 %v2637_v27  ;;  %1311 = vmatpush.bf16.msra.mxu3 %v2639_v28 }
 0x283   :  { %1273 = vmatpush.bf16.msra.mxu0 %v2642_v32  ;;  %1286 = vmatpush.bf16.msra.mxu1 %v2648_v38 }
 0x284   :  { %1299 = vmatpush.bf16.msra.mxu2 %v2652_v39  ;;  %1312 = vmatpush.bf16.msra.mxu3 %v2654_v40 }
 0x2e2   :  { %v997_v46 = vpop.f32.mrf.mxu0  ;;  %v1010_v54 = vpop.f32.mrf.mxu1 }
 0x2e3   :  { %v1044_v36 = vrot.slane %v997_v46, 5  ;;  %v1045_v35 = vrot.slane %v1010_v54, 5 }
 0x2e5   :  { %v1052_v23 = vadd.f32 %v1044_v36, %v2727_v7  ;;  %v1053_v31 = vadd.f32 %v1045_v35, %v2729_v8 }
 0x2e7   :  { %v2069_v18 = vmul.f32 -1.442695, %v1052_v23  ;;  %v2070_v30 = vmul.f32 -1.442695, %v1053_v31 }
 0x2e9   :  { %2247 = vpow2.f32 %v2069_v18  ;;  %v1023_v34 = vpop.f32.mrf.mxu2  ;;  %v1036_v57 = vpop.f32.mrf.mxu3 }
 0x2ea   :  { %2249 = vpow2.f32 %v2070_v30  ;;  %v1046_v2 = vrot.slane %v1023_v34, 5  ;;  %v999_v50 = vpop.f32.mrf.mxu0  ;;  %v1012_v37 = vpop.f32.mrf.mxu1  ;;  %v1047_v19 = vrot.slane %v1036_v57, 5 }
 0x2ec   :  { %v1054_v1 = vadd.f32 %v1046_v2, %v2733_v22  ;;  %v1055_v3 = vadd.f32 %v1047_v19, %v3016_v25 }
 0x2ee   :  { %v2071_v42 = vmul.f32 -1.442695, %v1054_v1 }
 0x2ef   :  { %v2248_v53 = vpop.eup %2247 }
 0x2f0   :  { %v2250_v10 = vpop.eup %2249  ;;  %v1065_v11 = vadd.f32 1.0, %v2248_v53  ;;  %2251 = vpow2.f32 %v2071_v42 }
 0x2f1   :  { %v1066_v56 = vadd.f32 1.0, %v2250_v10  ;;  %v1025_v48 = vpop.f32.mrf.mxu2  ;;  %v1038_v13 = vpop.f32.mrf.mxu3  ;;  %v1115_v10 = vrot.slane %v2830_v29, 7 }
 0x2f2   :  { %2253 = vrcp.f32 %v1065_v11  ;;  %v1079_v31 = vand.u32 2147483648, %v1065_v11  ;;  %v1077_v34 = vand.u32 2147483647, %v1065_v11  ;;  %vm1073_vm15 = vweird.f32 %v1065_v11 }
 0x2f3   :  { %2255 = vrcp.f32 %v1066_v56  ;;  %v1094_v18 = vand.u32 2147483648, %v1066_v56  ;;  %v1092_v57 = vand.u32 2147483647, %v1066_v56  ;;  %vm1088_vm7 = vweird.f32 %v1066_v56 }
 0x2f4   :  { %v1080_v42 = vor.u32 1.1754944e-38, %v1079_v31  ;;  %vm1078_vm10 = vcmp.eq.f32.partialorder %v1077_v34, 8.507059e+37 }
 0x2f5   :  { %v1095_v48 = vor.u32 1.1754944e-38, %v1094_v18  ;;  %vm1093_vm11 = vcmp.eq.f32.partialorder %v1092_v57, 8.507059e+37 }
 0x2f6   :  { %v2252_v47 = vpop.eup %2251 }
 0x2f7   :  { %v1067_v21 = vadd.f32 1.0, %v2252_v47 }
 0x2f8   :  { %v2254_v17 = vpop.eup %2253 }
 0x2f9   :  { %v2256_v46 = vpop.eup %2255  ;;  %v1069_v54 = vmul.f32 %v2254_v17, %v1065_v11  ;;  %2257 = vrcp.f32 %v1067_v21  ;;  %vm1074_vm0 = vweird.f32 %v2254_v17  ;;  %v1109_v29 = vand.u32 2147483648, %v1067_v21 }
 0x2fa   :  { %v1084_v36 = vmul.f32 %v2256_v46, %v1066_v56  ;;  %2259 = vtanh.f32 %v1055_v3  ;;  %vm1089_vm1 = vweird.f32 %v2256_v46  ;;  %vm1075_vm8 = vmor %vm1073_vm15, %vm1074_vm0  ;;  %vm1103_vm13 = vweird.f32 %v1067_v21 }
 0x2fb   :  { %v1070_v35 = vsub.f32 1.0, %v1069_v54  ;;  %vm1090_vm9 = vmor %vm1088_vm7, %vm1089_vm1  ;;  %v1107_v31 = vand.u32 2147483647, %v1067_v21  ;;  %v1110_v18 = vor.u32 1.1754944e-38, %v1109_v29 }
 0x2fc   :  { %v1085_v23 = vsub.f32 1.0, %v1084_v36 }
 0x2fd   :  { %v1071_v30 = vmul.f32 %v2254_v17, %v1070_v35  ;;  %vm1108_vm0 = vcmp.eq.f32.partialorder %v1107_v31, 8.507059e+37 }
 0x2fe   :  { %v1086_v2 = vmul.f32 %v2256_v46, %v1085_v23 }
 0x2ff   :  { %v2258_v50 = vpop.eup %2257  ;;  %v1072_v37 = vadd.f32 %v2254_v17, %v1071_v30 }
 0x300   :  { %v1099_v1 = vmul.f32 %v2258_v50, %v1067_v21  ;;  %v1087_v53 = vadd.f32 %v2256_v46, %v1086_v2  ;;  %v2260_v19 = vpop.eup %2259  ;;  %vm1104_vm12 = vweird.f32 %v2258_v50 }
 0x301   :  { %v1076_v13 = vsel %vm1075_vm8, %v2254_v17, %v1072_v37  ;;  %vm1105_vm14 = vmor %vm1103_vm13, %vm1104_vm12 }
 0x302   :  { %v1100_v47 = vsub.f32 1.0, %v1099_v1  ;;  %v1081_v3 = vsel %vm1078_vm10, %v1080_v42, %v1076_v13  ;;  %v1091_v54 = vsel %vm1090_vm9, %v2256_v46, %v1087_v53 }
 0x303   :  { %v1096_v36 = vsel %vm1093_vm11, %v1095_v48, %v1091_v54  ;;  %v1118_v35 = vmul.f32 %v2260_v19, %v1081_v3 }
 0x304   :  { %v1117_v23 = vmul.f32 %v1115_v10, %v1096_v36  ;;  %v1101_v11 = vmul.f32 %v2258_v50, %v1100_v47 }
 0x306   :  { %v2876_v56 = vadd.f32 %v1118_v35, %v1117_v23  ;;  %v1102_v30 = vadd.f32 %v2258_v50, %v1101_v11 }
 0x308   :  { %2261 = vtanh.f32 %v2876_v56  ;;  %v1106_v17 = vsel %vm1105_vm14, %v2258_v50, %v1102_v30 }
 0x309   :  { %v1111_v46 = vsel %vm1108_vm0, %v1110_v18, %v1106_v17 }
 0x30e   :  { %v2262_v34 = vpop.eup %2261 }
 0x30f   :  { %v1121_v2 = vmul.f32 %v2262_v34, %v1111_v46 }
 0x311   :  { %v1122_v57 = vpack.c.bf16 %v1121_v2, %v1121_v2  ;;  %v2881_v37 = vsel %vm131_vm2, %v2837_v24, %v1121_v2 }
 0x313   :  { %v1124_v1 = vshrl.u32 %v1122_v57, 16 }
 0x315   :  { %v1126_v42 = vrot.slane %v1124_v1, 1 }
 0x317   :  { %1136 = vmatmul.bf16.vlgmr.msrb.gmra.mxu0 %v1126_v42  ;;  %1149 = vmatmul.bf16.vlgmr.msrb.gmra.mxu1 %v1126_v42 }
 0x318   :  { %1162 = vmatmul.bf16.vlgmr.msrb.gmra.mxu2 %v1126_v42  ;;  %1175 = vmatmul.bf16.vlgmr.msrb.gmra.mxu3 %v1126_v42 }
 0x319   :  { %1406 = vmatpush.bf16.msrb.mxu0 %v2522_v43  ;;  %1419 = vmatpush.bf16.msrb.mxu1 %v2530_v51 }
 0x31a   :  { %1432 = vmatpush.bf16.msrb.mxu2 %v2532_v52  ;;  %1445 = vmatpush.bf16.msrb.mxu3 %v2536_v55 }
 0x31d   :  { %1407 = vmatpush.bf16.msrb.mxu0 %v2540_v58  ;;  %1420 = vmatpush.bf16.msrb.mxu1 %v2545_v61 }
 0x31e   :  { %1433 = vmatpush.bf16.msrb.mxu2 %v2547_v62  ;;  %1446 = vmatpush.bf16.msrb.mxu3 %v2549_v63 }
 0x321   :  { %1408 = vmatpush.bf16.msrb.mxu0 %v2560_v4  ;;  %1421 = vmatpush.bf16.msrb.mxu1 %v2562_v5 }
 0x322   :  { %1434 = vmatpush.bf16.msrb.mxu2 %v2567_v9  ;;  %1447 = vmatpush.bf16.msrb.mxu3 %v2571_v12 }
 0x325   :  { %1409 = vmatpush.bf16.msrb.mxu0 %v2592_v33  ;;  %1422 = vmatpush.bf16.msrb.mxu1 %v2599_v41 }
 0x326   :  { %1435 = vmatpush.bf16.msrb.mxu2 %v2601_v44  ;;  %1448 = vmatpush.bf16.msrb.mxu3 %v2603_v45 }
 0x329   :  { %1410 = vmatpush.bf16.msrb.mxu0 %v2606_v49  ;;  %1423 = vmatpush.bf16.msrb.mxu1 %v2609_v59 }
 0x32a   :  { %1436 = vmatpush.bf16.msrb.mxu2 %v2613_v60  ;;  %1449 = vmatpush.bf16.msrb.mxu3 %v2615_v0 }
 0x32d   :  { %1411 = vmatpush.bf16.msrb.mxu0 %v2618_v6  ;;  %1424 = vmatpush.bf16.msrb.mxu1 %v2621_v14 }
 0x32e   :  { %1437 = vmatpush.bf16.msrb.mxu2 %v2625_v15  ;;  %1450 = vmatpush.bf16.msrb.mxu3 %v2627_v16 }
 0x331   :  { %1412 = vmatpush.bf16.msrb.mxu0 %v2630_v20  ;;  %1425 = vmatpush.bf16.msrb.mxu1 %v2633_v26 }
 0x332   :  { %1438 = vmatpush.bf16.msrb.mxu2 %v2637_v27  ;;  %1451 = vmatpush.bf16.msrb.mxu3 %v2639_v28 }
 0x335   :  { %1413 = vmatpush.bf16.msrb.mxu0 %v2642_v32  ;;  %1426 = vmatpush.bf16.msrb.mxu1 %v2648_v38 }
 0x336   :  { %1439 = vmatpush.bf16.msrb.mxu2 %v2652_v39  ;;  %1452 = vmatpush.bf16.msrb.mxu3 %v2654_v40 }
 0x394   :  { %v1137_v24 = vpop.f32.mrf.mxu0  ;;  %v1150_v21 = vpop.f32.mrf.mxu1 }
 0x395   :  { %v1184_v50 = vrot.slane %v1137_v24, 4  ;;  %v1185_v53 = vrot.slane %v1150_v21, 4 }
 0x397   :  { %v1192_v10 = vadd.f32 %v1184_v50, %v2727_v7  ;;  %v1193_v48 = vadd.f32 %v1185_v53, %v2729_v8 }
 0x399   :  { %v2072_v13 = vmul.f32 -1.442695, %v1192_v10  ;;  %v2073_v19 = vmul.f32 -1.442695, %v1193_v48 }
 0x39b   :  { %2263 = vpow2.f32 %v2072_v13  ;;  %v1163_v47 = vpop.f32.mrf.mxu2  ;;  %v1176_v3 = vpop.f32.mrf.mxu3 }
 0x39c   :  { %2265 = vpow2.f32 %v2073_v19  ;;  %v1186_v54 = vrot.slane %v1163_v47, 4  ;;  %v1139_v36 = vpop.f32.mrf.mxu0  ;;  %v1152_v35 = vpop.f32.mrf.mxu1  ;;  %v1187_v46 = vrot.slane %v1176_v3, 4 }
 0x39e   :  { %v1194_v23 = vadd.f32 %v1186_v54, %v2733_v22  ;;  %v1195_v42 = vadd.f32 %v1187_v46, %v3016_v25 }
 0x3a0   :  { %v2074_v11 = vmul.f32 -1.442695, %v1194_v23 }
 0x3a1   :  { %v2264_v30 = vpop.eup %2263 }
 0x3a2   :  { %v2266_v29 = vpop.eup %2265  ;;  %v1205_v31 = vadd.f32 1.0, %v2264_v30  ;;  %2267 = vpow2.f32 %v2074_v11 }
 0x3a3   :  { %v1206_v17 = vadd.f32 1.0, %v2266_v29  ;;  %v1165_v18 = vpop.f32.mrf.mxu2  ;;  %v1178_v34 = vpop.f32.mrf.mxu3  ;;  %v1255_v29 = vrot.slane %v2876_v56, 7 }
 0x3a4   :  { %2269 = vrcp.f32 %v1205_v31  ;;  %v1219_v48 = vand.u32 2147483648, %v1205_v31  ;;  %v1217_v47 = vand.u32 2147483647, %v1205_v31  ;;  %vm1213_vm15 = vweird.f32 %v1205_v31 }
 0x3a5   :  { %2271 = vrcp.f32 %v1206_v17  ;;  %v1234_v13 = vand.u32 2147483648, %v1206_v17  ;;  %v1232_v3 = vand.u32 2147483647, %v1206_v17  ;;  %vm1228_vm7 = vweird.f32 %v1206_v17 }
 0x3a6   :  { %v1220_v11 = vor.u32 1.1754944e-38, %v1219_v48  ;;  %vm1218_vm10 = vcmp.eq.f32.partialorder %v1217_v47, 8.507059e+37 }
 0x3a7   :  { %v1235_v18 = vor.u32 1.1754944e-38, %v1234_v13  ;;  %vm1233_vm11 = vcmp.eq.f32.partialorder %v1232_v3, 8.507059e+37 }
 0x3a8   :  { %v2268_v2 = vpop.eup %2267 }
 0x3a9   :  { %v1207_v57 = vadd.f32 1.0, %v2268_v2 }
 0x3aa   :  { %v2270_v1 = vpop.eup %2269 }
 0x3ab   :  { %v2272_v24 = vpop.eup %2271  ;;  %v1209_v21 = vmul.f32 %v2270_v1, %v1205_v31  ;;  %2273 = vrcp.f32 %v1207_v57  ;;  %vm1214_vm2 = vweird.f32 %v2270_v1  ;;  %v1249_v56 = vand.u32 2147483648, %v1207_v57 }
 0x3ac   :  { %v1224_v50 = vmul.f32 %v2272_v24, %v1206_v17  ;;  %2275 = vtanh.f32 %v1195_v42  ;;  %vm1229_vm1 = vweird.f32 %v2272_v24  ;;  %vm1215_vm8 = vmor %vm1213_vm15, %vm1214_vm2  ;;  %vm1243_vm13 = vweird.f32 %v1207_v57 }
 0x3ad   :  { %v1210_v53 = vsub.f32 1.0, %v1209_v21  ;;  %vm1230_vm9 = vmor %vm1228_vm7, %vm1229_vm1  ;;  %v1247_v48 = vand.u32 2147483647, %v1207_v57  ;;  %v1250_v13 = vor.u32 1.1754944e-38, %v1249_v56 }
 0x3ae   :  { %v1225_v10 = vsub.f32 1.0, %v1224_v50 }
 0x3af   :  { %v1211_v19 = vmul.f32 %v2270_v1, %v1210_v53  ;;  %vm1248_vm0 = vcmp.eq.f32.partialorder %v1247_v48, 8.507059e+37 }
 0x3b0   :  { %v1226_v54 = vmul.f32 %v2272_v24, %v1225_v10 }
 0x3b1   :  { %v2274_v36 = vpop.eup %2273  ;;  %v1212_v35 = vadd.f32 %v2270_v1, %v1211_v19 }
 0x3b2   :  { %v1239_v23 = vmul.f32 %v2274_v36, %v1207_v57  ;;  %v1227_v30 = vadd.f32 %v2272_v24, %v1226_v54  ;;  %v2276_v46 = vpop.eup %2275  ;;  %vm1244_vm12 = vweird.f32 %v2274_v36 }
 0x3b3   :  { %v1216_v34 = vsel %vm1215_vm8, %v2270_v1, %v1212_v35  ;;  %vm1245_vm14 = vmor %vm1243_vm13, %vm1244_vm12 }
 0x3b4   :  { %v1240_v2 = vsub.f32 1.0, %v1239_v23  ;;  %v1221_v42 = vsel %vm1218_vm10, %v1220_v11, %v1216_v34  ;;  %v1231_v21 = vsel %vm1230_vm9, %v2272_v24, %v1227_v30 }
 0x3b5   :  { %v1236_v50 = vsel %vm1233_vm11, %v1235_v18, %v1231_v21  ;;  %v1258_v53 = vmul.f32 %v2276_v46, %v1221_v42 }
 0x3b6   :  { %v1257_v10 = vmul.f32 %v1255_v29, %v1236_v50  ;;  %v1241_v31 = vmul.f32 %v2274_v36, %v1240_v2 }
 0x3b8   :  { %v2920_v17 = vadd.f32 %v1258_v53, %v1257_v10  ;;  %v1242_v19 = vadd.f32 %v2274_v36, %v1241_v31 }
 0x3ba   :  { %2277 = vtanh.f32 %v2920_v17  ;;  %v1246_v1 = vsel %vm1245_vm14, %v2274_v36, %v1242_v19  ;;  %v1393_v42 = vrot.slane %v2920_v17, 7 }
 0x3bb   :  { %v1251_v24 = vsel %vm1248_vm0, %v1250_v13, %v1246_v1 }
 0x3c0   :  { %v2278_v47 = vpop.eup %2277 }
 0x3c1   :  { %v1261_v54 = vmul.f32 %v2278_v47, %v1251_v24 }
 0x3c3   :  { %v1262_v3 = vpack.c.bf16 %v1261_v54, %v1261_v54  ;;  %v2925_v35 = vsel %vm133_vm3, %v2881_v37, %v1261_v54 }
 0x3c5   :  { %v1264_v23 = vrot.slane %v1262_v3, 2 }
 0x3c7   :  { %1274 = vmatmul.bf16.vlgmr.msra.gmra.mxu0 %v1264_v23  ;;  %1287 = vmatmul.bf16.vlgmr.msra.gmra.mxu1 %v1264_v23 }
 0x3c8   :  { %1300 = vmatmul.bf16.vlgmr.msra.gmra.mxu2 %v1264_v23  ;;  %1313 = vmatmul.bf16.vlgmr.msra.gmra.mxu3 %v1264_v23 }
 0x3c9   :  { %1544 = vmatpush.bf16.msra.mxu0 %v2522_v43  ;;  %1557 = vmatpush.bf16.msra.mxu1 %v2530_v51 }
 0x3ca   :  { %1570 = vmatpush.bf16.msra.mxu2 %v2532_v52  ;;  %1583 = vmatpush.bf16.msra.mxu3 %v2536_v55 }
 0x3cd   :  { %1545 = vmatpush.bf16.msra.mxu0 %v2540_v58  ;;  %1558 = vmatpush.bf16.msra.mxu1 %v2545_v61 }
 0x3ce   :  { %1571 = vmatpush.bf16.msra.mxu2 %v2547_v62  ;;  %1584 = vmatpush.bf16.msra.mxu3 %v2549_v63 }
 0x3d1   :  { %1546 = vmatpush.bf16.msra.mxu0 %v2560_v4  ;;  %1559 = vmatpush.bf16.msra.mxu1 %v2562_v5 }
 0x3d2   :  { %1572 = vmatpush.bf16.msra.mxu2 %v2567_v9  ;;  %1585 = vmatpush.bf16.msra.mxu3 %v2571_v12 }
 0x3d5   :  { %1547 = vmatpush.bf16.msra.mxu0 %v2592_v33  ;;  %1560 = vmatpush.bf16.msra.mxu1 %v2599_v41 }
 0x3d6   :  { %1573 = vmatpush.bf16.msra.mxu2 %v2601_v44  ;;  %1586 = vmatpush.bf16.msra.mxu3 %v2603_v45 }
 0x3d9   :  { %1548 = vmatpush.bf16.msra.mxu0 %v2606_v49  ;;  %1561 = vmatpush.bf16.msra.mxu1 %v2609_v59 }
 0x3da   :  { %1574 = vmatpush.bf16.msra.mxu2 %v2613_v60  ;;  %1587 = vmatpush.bf16.msra.mxu3 %v2615_v0 }
 0x3dd   :  { %1549 = vmatpush.bf16.msra.mxu0 %v2618_v6  ;;  %1562 = vmatpush.bf16.msra.mxu1 %v2621_v14 }
 0x3de   :  { %1575 = vmatpush.bf16.msra.mxu2 %v2625_v15  ;;  %1588 = vmatpush.bf16.msra.mxu3 %v2627_v16 }
 0x3e1   :  { %1550 = vmatpush.bf16.msra.mxu0 %v2630_v20  ;;  %1563 = vmatpush.bf16.msra.mxu1 %v2633_v26 }
 0x3e2   :  { %1576 = vmatpush.bf16.msra.mxu2 %v2637_v27  ;;  %1589 = vmatpush.bf16.msra.mxu3 %v2639_v28 }
 0x3e5   :  { %1551 = vmatpush.bf16.msra.mxu0 %v2642_v32  ;;  %1564 = vmatpush.bf16.msra.mxu1 %v2648_v38 }
 0x3e6   :  { %1577 = vmatpush.bf16.msra.mxu2 %v2652_v39  ;;  %1590 = vmatpush.bf16.msra.mxu3 %v2654_v40 }
 0x444   :  { %v1275_v43 = vpop.f32.mrf.mxu0  ;;  %v1288_v51 = vpop.f32.mrf.mxu1 }
 0x445   :  { %v1322_v52 = vrot.slane %v1275_v43, 3  ;;  %v1323_v55 = vrot.slane %v1288_v51, 3 }
 0x447   :  { %v1330_v58 = vadd.f32 %v1322_v52, %v2727_v7  ;;  %v1331_v61 = vadd.f32 %v1323_v55, %v2729_v8 }
 0x449   :  { %v2075_v62 = vmul.f32 -1.442695, %v1330_v58  ;;  %v2076_v63 = vmul.f32 -1.442695, %v1331_v61 }
 0x44b   :  { %2279 = vpow2.f32 %v2075_v62  ;;  %v1301_v4 = vpop.f32.mrf.mxu2  ;;  %v1314_v5 = vpop.f32.mrf.mxu3 }
 0x44c   :  { %2281 = vpow2.f32 %v2076_v63  ;;  %v1324_v9 = vrot.slane %v1301_v4, 3  ;;  %v1277_v12 = vpop.f32.mrf.mxu0  ;;  %v1290_v33 = vpop.f32.mrf.mxu1  ;;  %v1325_v14 = vrot.slane %v1314_v5, 3 }
 0x44e   :  { %v1332_v41 = vadd.f32 %v1324_v9, %v2733_v22  ;;  %v1333_v26 = vadd.f32 %v1325_v14, %v3016_v25 }
 0x450   :  { %v2077_v44 = vmul.f32 -1.442695, %v1332_v41 }
 0x451   :  { %v2280_v45 = vpop.eup %2279 }
 0x452   :  { %v2282_v49 = vpop.eup %2281  ;;  %v1343_v59 = vadd.f32 1.0, %v2280_v45  ;;  %2283 = vpow2.f32 %v2077_v44 }
 0x453   :  { %v1344_v60 = vadd.f32 1.0, %v2282_v49  ;;  %v1303_v0 = vpop.f32.mrf.mxu2  ;;  %v1316_v6 = vpop.f32.mrf.mxu3 }
 0x454   :  { %2285 = vrcp.f32 %v1343_v59  ;;  %v1357_v40 = vand.u32 2147483648, %v1343_v59  ;;  %v1355_v36 = vand.u32 2147483647, %v1343_v59  ;;  %vm1351_vm1 = vweird.f32 %v1343_v59 }
 0x455   :  { %2287 = vrcp.f32 %v1344_v60  ;;  %v1372_v37 = vand.u32 2147483648, %v1344_v60  ;;  %v1370_v30 = vand.u32 2147483647, %v1344_v60  ;;  %vm1366_vm15 = vweird.f32 %v1344_v60 }
 0x456   :  { %v1358_v46 = vor.u32 1.1754944e-38, %v1357_v40  ;;  %vm1356_vm9 = vcmp.eq.f32.partialorder %v1355_v36, 8.507059e+37 }
 0x457   :  { %v1373_v21 = vor.u32 1.1754944e-38, %v1372_v37  ;;  %vm1371_vm10 = vcmp.eq.f32.partialorder %v1370_v30, 8.507059e+37 }
 0x458   :  { %v2284_v15 = vpop.eup %2283 }
 0x459   :  { %v1345_v16 = vadd.f32 1.0, %v2284_v15 }
 0x45a   :  { %v2286_v20 = vpop.eup %2285 }
 0x45b   :  { %v2288_v27 = vpop.eup %2287  ;;  %v1347_v28 = vmul.f32 %v2286_v20, %v1343_v59  ;;  %2289 = vrcp.f32 %v1345_v16  ;;  %vm1352_vm3 = vweird.f32 %v2286_v20  ;;  %v1387_v17 = vand.u32 2147483648, %v1345_v16 }
 0x45c   :  { %v1362_v32 = vmul.f32 %v2288_v27, %v1344_v60  ;;  %2291 = vtanh.f32 %v1333_v26  ;;  %vm1367_vm2 = vweird.f32 %v2288_v27  ;;  %vm1353_vm7 = vmor %vm1351_vm1, %vm1352_vm3  ;;  %vm1381_vm12 = vweird.f32 %v1345_v16 }
 0x45d   :  { %v1348_v38 = vsub.f32 1.0, %v1347_v28  ;;  %vm1368_vm8 = vmor %vm1366_vm15, %vm1367_vm2  ;;  %v1385_v54 = vand.u32 2147483647, %v1345_v16  ;;  %v1388_v23 = vor.u32 1.1754944e-38, %v1387_v17 }
 0x45e   :  { %v1363_v39 = vsub.f32 1.0, %v1362_v32 }
 0x45f   :  { %v1349_v57 = vmul.f32 %v2286_v20, %v1348_v38  ;;  %vm1386_vm14 = vcmp.eq.f32.partialorder %v1385_v54, 8.507059e+37 }
 0x460   :  { %v1364_v11 = vmul.f32 %v2288_v27, %v1363_v39 }
 0x461   :  { %v2290_v29 = vpop.eup %2289  ;;  %v1350_v18 = vadd.f32 %v2286_v20, %v1349_v57 }
 0x462   :  { %v1377_v34 = vmul.f32 %v2290_v29, %v1345_v16  ;;  %v1365_v2 = vadd.f32 %v2288_v27, %v1364_v11  ;;  %v2292_v53 = vpop.eup %2291  ;;  %vm1382_vm11 = vweird.f32 %v2290_v29 }
 0x463   :  { %v1354_v50 = vsel %vm1353_vm7, %v2286_v20, %v1350_v18  ;;  %vm1383_vm13 = vmor %vm1381_vm12, %vm1382_vm11 }
 0x464   :  { %v1378_v10 = vsub.f32 1.0, %v1377_v34  ;;  %v1359_v31 = vsel %vm1356_vm9, %v1358_v46, %v1354_v50  ;;  %v1369_v19 = vsel %vm1368_vm8, %v2288_v27, %v1365_v2 }
 0x465   :  { %v1374_v56 = vsel %vm1371_vm10, %v1373_v21, %v1369_v19  ;;  %v1396_v48 = vmul.f32 %v2292_v53, %v1359_v31 }
 0x466   :  { %v1395_v1 = vmul.f32 %v1393_v42, %v1374_v56  ;;  %v1379_v13 = vmul.f32 %v2290_v29, %v1378_v10 }
 0x468   :  { %v2964_v47 = vadd.f32 %v1396_v48, %v1395_v1  ;;  %v1380_v24 = vadd.f32 %v2290_v29, %v1379_v13 }
 0x46a   :  { %2293 = vtanh.f32 %v2964_v47  ;;  %v1384_v3 = vsel %vm1383_vm13, %v2290_v29, %v1380_v24  ;;  %v1533_v19 = vrot.slane %v2964_v47, 7 }
 0x46b   :  { %v1389_v51 = vsel %vm1386_vm14, %v1388_v23, %v1384_v3 }
 0x470   :  { %v2294_v43 = vpop.eup %2293 }
 0x471   :  { %v1399_v52 = vmul.f32 %v2294_v43, %v1389_v51 }
 0x473   :  { %v1400_v55 = vpack.c.bf16 %v1399_v52, %v1399_v52  ;;  %v2969_v58 = vsel %vm135_vm4, %v2925_v35, %v1399_v52 }
 0x475   :  { %v1402_v61 = vshrl.u32 %v1400_v55, 16 }
 0x477   :  { %v1404_v62 = vrot.slane %v1402_v61, 2 }
 0x479   :  { %1414 = vmatmul.bf16.vlgmr.msrb.gmra.mxu0 %v1404_v62  ;;  %1427 = vmatmul.bf16.vlgmr.msrb.gmra.mxu1 %v1404_v62 }
 0x47a   :  { %1440 = vmatmul.bf16.vlgmr.msrb.gmra.mxu2 %v1404_v62  ;;  %1453 = vmatmul.bf16.vlgmr.msrb.gmra.mxu3 %v1404_v62 }
 0x4f6   :  { %v1415_v63 = vpop.f32.mrf.mxu0  ;;  %v1428_v4 = vpop.f32.mrf.mxu1 }
 0x4f7   :  { %v1462_v5 = vrot.slane %v1415_v63, 2  ;;  %v1463_v9 = vrot.slane %v1428_v4, 2 }
 0x4f9   :  { %v1470_v12 = vadd.f32 %v1462_v5, %v2727_v7  ;;  %v1471_v33 = vadd.f32 %v1463_v9, %v2729_v8 }
 0x4fb   :  { %v2078_v41 = vmul.f32 -1.442695, %v1470_v12  ;;  %v2079_v44 = vmul.f32 -1.442695, %v1471_v33 }
 0x4fd   :  { %2295 = vpow2.f32 %v2078_v41  ;;  %v1441_v45 = vpop.f32.mrf.mxu2  ;;  %v1454_v35 = vpop.f32.mrf.mxu3  ;;  %v2187_v41 = vld [vmem:[#allocation9 + $0x38] sm:$0xff] }
 0x4fe   :  { %2297 = vpow2.f32 %v2079_v44  ;;  %v1464_v49 = vrot.slane %v1441_v45, 2  ;;  %v1417_v59 = vpop.f32.mrf.mxu0  ;;  %v1430_v60 = vpop.f32.mrf.mxu1  ;;  %v1465_v28 = vrot.slane %v1454_v35, 2  ;;  %1754 = vmatpush.bf16.msrb.mxu0 %v2187_v41  ;;  %v2186_v44 = vld [vmem:[#allocation9 + $0x30] sm:$0xff]  ;;  %v2185_v45 = vld [vmem:[#allocation9 + $0x28] sm:$0xff]  ;;  %v2184_v35 = vld [vmem:[#allocation9 + $0x20] sm:$0xff] }
 0x500   :  { %v1472_v0 = vadd.f32 %v1464_v49, %v2733_v22  ;;  %v1473_v40 = vadd.f32 %v1465_v28, %v3016_v25 }
 0x502   :  { %v2080_v6 = vmul.f32 -1.442695, %v1472_v0  ;;  %1755 = vmatpush.bf16.msrb.mxu0 %v2186_v44 }
 0x503   :  { %v2296_v14 = vpop.eup %2295 }
 0x504   :  { %v2298_v15 = vpop.eup %2297  ;;  %v1483_v16 = vadd.f32 1.0, %v2296_v14  ;;  %2299 = vpow2.f32 %v2080_v6  ;;  %v2183_v6 = vld [vmem:[#allocation9 + $0x18] sm:$0xff] }
 0x505   :  { %v1484_v20 = vadd.f32 1.0, %v2298_v15  ;;  %v1443_v26 = vpop.f32.mrf.mxu2  ;;  %v1456_v27 = vpop.f32.mrf.mxu3 }
 0x506   :  { %2301 = vrcp.f32 %v1483_v16  ;;  %v1497_v29 = vand.u32 2147483648, %v1483_v16  ;;  %v1495_v46 = vand.u32 2147483647, %v1483_v16  ;;  %vm1491_vm3 = vweird.f32 %v1483_v16  ;;  %1756 = vmatpush.bf16.msrb.mxu0 %v2185_v45 }
 0x507   :  { %2303 = vrcp.f32 %v1484_v20  ;;  %v1512_v18 = vand.u32 2147483648, %v1484_v20  ;;  %v1510_v42 = vand.u32 2147483647, %v1484_v20  ;;  %vm1506_vm2 = vweird.f32 %v1484_v20 }
 0x508   :  { %v1498_v10 = vor.u32 1.1754944e-38, %v1497_v29  ;;  %vm1496_vm7 = vcmp.eq.f32.partialorder %v1495_v46, 8.507059e+37 }
 0x509   :  { %v1513_v56 = vor.u32 1.1754944e-38, %v1512_v18  ;;  %vm1511_vm8 = vcmp.eq.f32.partialorder %v1510_v42, 8.507059e+37 }
 0x50a   :  { %v2300_v32 = vpop.eup %2299  ;;  %1757 = vmatpush.bf16.msrb.mxu0 %v2184_v35 }
 0x50b   :  { %v1485_v38 = vadd.f32 1.0, %v2300_v32 }
 0x50c   :  { %v2302_v39 = vpop.eup %2301 }
 0x50d   :  { %v2304_v37 = vpop.eup %2303  ;;  %v1487_v57 = vmul.f32 %v2302_v39, %v1483_v16  ;;  %2305 = vrcp.f32 %v1485_v38  ;;  %vm1492_vm4 = vweird.f32 %v2302_v39  ;;  %v1527_v47 = vand.u32 2147483648, %v1485_v38 }
 0x50e   :  { %v1502_v36 = vmul.f32 %v2304_v37, %v1484_v20  ;;  %2307 = vtanh.f32 %v1473_v40  ;;  %vm1507_vm0 = vweird.f32 %v2304_v37  ;;  %vm1493_vm1 = vmor %vm1491_vm3, %vm1492_vm4  ;;  %vm1521_vm10 = vweird.f32 %v1485_v38  ;;  %1758 = vmatpush.bf16.msrb.mxu0 %v2183_v6  ;;  %v2182_v20 = vld [vmem:[#allocation9 + $0x10] sm:$0xff] }
 0x50f   :  { %v1488_v11 = vsub.f32 1.0, %v1487_v57  ;;  %vm1508_vm15 = vmor %vm1506_vm2, %vm1507_vm0  ;;  %v1525_v55 = vand.u32 2147483647, %v1485_v38  ;;  %v1528_v62 = vor.u32 1.1754944e-38, %v1527_v47 }
 0x510   :  { %v1503_v30 = vsub.f32 1.0, %v1502_v36 }
 0x511   :  { %v1489_v34 = vmul.f32 %v2302_v39, %v1488_v11  ;;  %vm1526_vm12 = vcmp.eq.f32.partialorder %v1525_v55, 8.507059e+37 }
 0x512   :  { %v1504_v2 = vmul.f32 %v2304_v37, %v1503_v30  ;;  %1759 = vmatpush.bf16.msrb.mxu0 %v2182_v20 }
 0x513   :  { %v2306_v21 = vpop.eup %2305  ;;  %v1490_v50 = vadd.f32 %v2302_v39, %v1489_v34 }
 0x514   :  { %v1517_v53 = vmul.f32 %v2306_v21, %v1485_v38  ;;  %v1505_v31 = vadd.f32 %v2304_v37, %v1504_v2  ;;  %v2308_v1 = vpop.eup %2307  ;;  %vm1522_vm9 = vweird.f32 %v2306_v21 }
 0x515   :  { %v1494_v48 = vsel %vm1493_vm1, %v2302_v39, %v1490_v50  ;;  %vm1523_vm11 = vmor %vm1521_vm10, %vm1522_vm9  ;;  %v2181_v39 = vld [vmem:[#allocation9 + $0x8] sm:$0xff] }
 0x516   :  { %v1518_v13 = vsub.f32 1.0, %v1517_v53  ;;  %v1499_v24 = vsel %vm1496_vm7, %v1498_v10, %v1494_v48  ;;  %v1509_v17 = vsel %vm1508_vm15, %v2304_v37, %v1505_v31  ;;  %1760 = vmatpush.bf16.msrb.mxu0 %v2181_v39 }
 0x517   :  { %v1514_v54 = vsel %vm1511_vm8, %v1513_v56, %v1509_v17  ;;  %v1536_v3 = vmul.f32 %v2308_v1, %v1499_v24 }
 0x518   :  { %v1535_v23 = vmul.f32 %v1533_v19, %v1514_v54  ;;  %v1519_v43 = vmul.f32 %v2306_v21, %v1518_v13 }
 0x51a   :  { %v2976_v51 = vadd.f32 %v1536_v3, %v1535_v23  ;;  %v1520_v52 = vadd.f32 %v2306_v21, %v1519_v43 }
 0x51c   :  { %2309 = vtanh.f32 %v2976_v51  ;;  %v1524_v61 = vsel %vm1523_vm11, %v2306_v21, %v1520_v52  ;;  %v1671_v23 = vrot.slane %v2976_v51, 7 }
 0x51d   :  { %v1529_v4 = vsel %vm1526_vm12, %v1528_v62, %v1524_v61 }
 0x522   :  { %v2310_v63 = vpop.eup %2309 }
 0x523   :  { %v1539_v5 = vmul.f32 %v2310_v63, %v1529_v4 }
 0x525   :  { %v1540_v9 = vpack.c.bf16 %v1539_v5, %v1539_v5  ;;  %v2981_v12 = vsel %vm137_vm5, %v2969_v58, %v1539_v5 }
 0x527   :  { %v1542_v33 = vrot.slane %v1540_v9, 3 }
 0x529   :  { %1552 = vmatmul.bf16.vlgmr.msra.gmra.mxu0 %v1542_v33  ;;  %1565 = vmatmul.bf16.vlgmr.msra.gmra.mxu1 %v1542_v33 }
 0x52a   :  { %1578 = vmatmul.bf16.vlgmr.msra.gmra.mxu2 %v1542_v33  ;;  %1591 = vmatmul.bf16.vlgmr.msra.gmra.mxu3 %v1542_v33 }
 0x5a6   :  { %v1553_v49 = vpop.f32.mrf.mxu0  ;;  %v1566_v59 = vpop.f32.mrf.mxu1 }
 0x5a7   :  { %v1600_v60 = vrot.slane %v1553_v49, 1  ;;  %v1601_v0 = vrot.slane %v1566_v59, 1 }
 0x5a9   :  { %v1608_v58 = vadd.f32 %v1600_v60, %v2727_v7  ;;  %v1609_v14 = vadd.f32 %v1601_v0, %v2729_v8  ;;  %v2180_v7 = vld [vmem:[#allocation9] sm:$0xff] }
 0x5aa   :  { %1761 = vmatpush.bf16.msrb.mxu0 %v2180_v7 }
 0x5ab   :  { %v2081_v15 = vmul.f32 -1.442695, %v1608_v58  ;;  %v2082_v16 = vmul.f32 -1.442695, %v1609_v14  ;;  %v2198_v58 = vld [vmem:[%s3007_s5] ss:$0 sm:$0xff] }
 0x5ad   :  { %2311 = vpow2.f32 %v2081_v15  ;;  %v1579_v26 = vpop.f32.mrf.mxu2  ;;  %v1592_v27 = vpop.f32.mrf.mxu3 }
 0x5ae   :  { %2313 = vpow2.f32 %v2082_v16  ;;  %v1602_v28 = vrot.slane %v1579_v26, 1  ;;  %v1555_v32 = vpop.f32.mrf.mxu0  ;;  %v1568_v38 = vpop.f32.mrf.mxu1  ;;  %v1603_v18 = vrot.slane %v1592_v27, 1 }
 0x5b0   :  { %v1610_v40 = vadd.f32 %v1602_v28, %v2733_v22  ;;  %v1611_v42 = vadd.f32 %v1603_v18, %v3016_v25 }
 0x5b2   :  { %v2083_v37 = vmul.f32 -1.442695, %v1610_v40 }
 0x5b3   :  { %v2312_v57 = vpop.eup %2311 }
 0x5b4   :  { %v2314_v8 = vpop.eup %2313  ;;  %v1621_v36 = vadd.f32 1.0, %v2312_v57  ;;  %2315 = vpow2.f32 %v2083_v37 }
 0x5b5   :  { %v1622_v11 = vadd.f32 1.0, %v2314_v8  ;;  %v1581_v30 = vpop.f32.mrf.mxu2  ;;  %v1594_v29 = vpop.f32.mrf.mxu3 }
 0x5b6   :  { %2317 = vrcp.f32 %v1621_v36  ;;  %v1635_v31 = vand.u32 2147483648, %v1621_v36  ;;  %v1633_v48 = vand.u32 2147483647, %v1621_v36  ;;  %vm1629_vm14 = vweird.f32 %v1621_v36 }
 0x5b7   :  { %2319 = vrcp.f32 %v1622_v11  ;;  %v1650_v19 = vand.u32 2147483648, %v1622_v11  ;;  %v1648_v13 = vand.u32 2147483647, %v1622_v11  ;;  %vm1644_vm4 = vweird.f32 %v1622_v11 }
 0x5b8   :  { %v1636_v54 = vor.u32 1.1754944e-38, %v1635_v31  ;;  %vm1634_vm2 = vcmp.eq.f32.partialorder %v1633_v48, 8.507059e+37 }
 0x5b9   :  { %v1651_v43 = vor.u32 1.1754944e-38, %v1650_v19  ;;  %vm1649_vm1 = vcmp.eq.f32.partialorder %v1648_v13, 8.507059e+37 }
 0x5ba   :  { %v2316_v34 = vpop.eup %2315 }
 0x5bb   :  { %v1623_v46 = vadd.f32 1.0, %v2316_v34 }
 0x5bc   :  { %v2318_v2 = vpop.eup %2317 }
 0x5bd   :  { %v2320_v22 = vpop.eup %2319  ;;  %v1625_v21 = vmul.f32 %v2318_v2, %v1621_v36  ;;  %2321 = vrcp.f32 %v1623_v46  ;;  %vm1630_vm5 = vweird.f32 %v2318_v2  ;;  %v1665_v44 = vand.u32 2147483648, %v1623_v46 }
 0x5be   :  { %v1640_v50 = vmul.f32 %v2320_v22, %v1622_v11  ;;  %2323 = vtanh.f32 %v1611_v42  ;;  %vm1645_vm13 = vweird.f32 %v2320_v22  ;;  %vm1631_vm0 = vmor %vm1629_vm14, %vm1630_vm5  ;;  %vm1659_vm7 = vweird.f32 %v1623_v46 }
 0x5bf   :  { %v1626_v53 = vsub.f32 1.0, %v1625_v21  ;;  %vm1646_vm3 = vmor %vm1644_vm4, %vm1645_vm13  ;;  %v1663_v51 = vand.u32 2147483647, %v1623_v46  ;;  %v1666_v35 = vor.u32 1.1754944e-38, %v1665_v44 }
 0x5c0   :  { %v1641_v10 = vsub.f32 1.0, %v1640_v50 }
 0x5c1   :  { %v1627_v56 = vmul.f32 %v2318_v2, %v1626_v53  ;;  %vm1664_vm9 = vcmp.eq.f32.partialorder %v1663_v51, 8.507059e+37 }
 0x5c2   :  { %v1642_v1 = vmul.f32 %v2320_v22, %v1641_v10 }
 0x5c3   :  { %v2322_v24 = vpop.eup %2321  ;;  %v1628_v17 = vadd.f32 %v2318_v2, %v1627_v56 }
 0x5c4   :  { %v1655_v25 = vmul.f32 %v2322_v24, %v1623_v46  ;;  %v1643_v3 = vadd.f32 %v2320_v22, %v1642_v1  ;;  %v2324_v47 = vpop.eup %2323  ;;  %vm1660_vm15 = vweird.f32 %v2322_v24 }
 0x5c5   :  { %v1632_v52 = vsel %vm1631_vm0, %v2318_v2, %v1628_v17  ;;  %vm1661_vm8 = vmor %vm1659_vm7, %vm1660_vm15 }
 0x5c6   :  { %v1656_v55 = vsub.f32 1.0, %v1655_v25  ;;  %v1637_v61 = vsel %vm1634_vm2, %v1636_v54, %v1632_v52  ;;  %v1647_v62 = vsel %vm1646_vm3, %v2320_v22, %v1643_v3 }
 0x5c7   :  { %v1652_v63 = vsel %vm1649_vm1, %v1651_v43, %v1647_v62  ;;  %v1674_v4 = vmul.f32 %v2324_v47, %v1637_v61 }
 0x5c8   :  { %v1657_v5 = vmul.f32 %v2322_v24, %v1656_v55  ;;  %v1673_v9 = vmul.f32 %v1671_v23, %v1652_v63 }
 0x5ca   :  { %v1675_v33 = vadd.f32 %v1674_v4, %v1673_v9  ;;  %v1658_v41 = vadd.f32 %v2322_v24, %v1657_v5 }
 0x5cc   :  { %2325 = vtanh.f32 %v1675_v33  ;;  %1769 = vst [vmem:[%s3012_s10 - $0x7] sm:$0x80] %v1675_v33  ;;  %v1662_v45 = vsel %vm1661_vm8, %v2322_v24, %v1658_v41 }
 0x5cd   :  { %v1667_v59 = vsel %vm1664_vm9, %v1666_v35, %v1662_v45 }
 0x5d2   :  { %v2326_v49 = vpop.eup %2325 }
 0x5d3   :  { %v1677_v60 = vmul.f32 %v2326_v49, %v1667_v59 }
 0x5d5   :  { %v1684_v0 = vsel %vm139_vm6, %v2981_v12, %v1677_v60  ;;  %1768 = vst [vmem:[%s3011_s9 - $0x7] sm:$0x80] %v1677_v60 }
 0x5d6   :  { %v1685_v6 = vpack.c.bf16 %v1684_v0, %v1684_v0 }
 0x5d8   :  { %1762 = vmatmul.bf16.vlgmr.msrb.gmra.mxu0 %v1685_v6 }
 0x655   :  { %v1763_v14 = vpop.f32.mrf.mxu0 }
 0x656   :  { %v1764_v15 = vadd.f32 %v2198_v58, %v1763_v14 }
 0x658   :  { %1767 = vst [vmem:[#allocation10] sm:$0xff] %v1764_v15 }
 0x659   :  { %1780 = dma.vmem_to_hbm [thread:$0]  %s1776_s28, 128, %s1778_s0, [#allocation4]  }
 0x65d   :  { %v1765_v12 = vpop.f32.mrf.mxu0 }
 0x65e   :  { %2441 = dma.done.wait [#allocation4], 128  }
 0x65f   :  { %2442 = vsyncadd [#allocation4], 4294967168 }
 0x660   :  { %1793 = vsyncpa [#allocation3], 1 }
 0x661   :  { %1794 = vsyncpa [#allocation8], 1 }
 0x662   :  { %1795 = vsyncpa [#allocation4], 1 }
 0x663   :  { %1796 = vsyncpa [#allocation5], 1 }

</bundles_post_ra>
